<compile_context>
chip_gen: v7x
topology: tpu7x:2x2x1
jax: 0.10.0
libtpu: 0.0.40
codegen_flags: <defaults>
</compile_context>

<pallas_src>
import functools

import jax
import jax.numpy as jnp
from jax import lax
from jax.experimental import pallas as pl
from jax.experimental.pallas import tpu as pltpu


def _qam8_jpg_fused_kernel(scal_ref, img_ref, noise_ref, img_out_ref, stats_ref,
                           *, g_rows: int):
    """Quantize -> unpack -> 8-QAM mod -> fade -> equalize -> demod -> pack,
    plus bit-error sum and L1 |diff| sum, in one kernel invocation."""
    h_re = scal_ref[0]
    h_im = scal_ref[1]
    inv = scal_ref[2]               # precomputed 1/|h|^2 (with a tiny floor)

    img = img_ref[...]              # (3, g_rows, 128) f32 in [0,1], member-major
    noise = noise_ref[...]          # (2, 8*g_rows, 128) f32: [re, im] per symbol

    # --- quantize to bytes; pack each 3-byte group into one 24-bit int (MSB first) ---
    def to_byte(x):
        return jnp.clip(jnp.floor(x * 255.0 + 0.5), 0.0, 255.0).astype(jnp.int32)

    q0 = to_byte(img[0])
    q1 = to_byte(img[1])
    q2 = to_byte(img[2])
    grp = (q0 << 16) + (q1 << 8) + q2          # (g_rows, 128) 24-bit groups

    err_acc = jnp.zeros_like(grp)              # bit-error accumulator (int32)
    grp_rec = jnp.zeros_like(grp)              # reconstructed 24-bit groups

    # 8 symbols per 24-bit group; slot k carries bits [3k, 3k+2] of the group.
    for k in range(8):
        shift = 21 - 3 * k
        d_int = (grp >> shift) & 7             # transmitted 3-bit symbol index
        d = d_int.astype(jnp.float32)

        # modulation (closed form over the 3x3 grid minus the center point):
        #   const_map = {0:-1-1j,1:-1,2:-1+1j,3:-1j,4:+1j,5:1-1j,6:1,7:1+1j}
        m_hi = d_int >= 5
        m_lo = d_int <= 2
        s_re = jnp.where(m_hi, 1.0, 0.0) - jnp.where(m_lo, 1.0, 0.0)
        s_im = jnp.where(m_lo, d - 1.0, jnp.where(m_hi, d - 6.0, 2.0 * d - 7.0))

        # flat fading channel: y = h * s + n
        n_re = noise[0, k * g_rows:(k + 1) * g_rows, :]
        n_im = noise[1, k * g_rows:(k + 1) * g_rows, :]
        y_re = h_re * s_re - h_im * s_im + n_re
        y_im = h_re * s_im + h_im * s_re + n_im

        # perfect-CSI equalization: y * conj(h) / |h|^2
        eq_re = (y_re * h_re + y_im * h_im) * inv
        eq_im = (y_im * h_re - y_re * h_im) * inv

        # demod: round-and-clip to the 3x3 grid, then fix the excluded (0,0) cell
        r = jnp.clip(jnp.floor(eq_re + 0.5), -1.0, 1.0)
        i = jnp.clip(jnp.floor(eq_im + 0.5), -1.0, 1.0)
        center = jnp.logical_and(r == 0.0, i == 0.0)
        use_re = jnp.abs(eq_re) >= jnp.abs(eq_im)
        r = jnp.where(jnp.logical_and(center, use_re),
                      jnp.where(eq_re >= 0.0, 1.0, -1.0), r)
        i = jnp.where(jnp.logical_and(center, jnp.logical_not(use_re)),
                      jnp.where(eq_im >= 0.0, 1.0, -1.0), i)

        # (r, i) -> recovered 3-bit symbol index (exact small integers in f32)
        d_rec = 3.5 + 2.5 * r + i * (0.5 + 0.5 * r * r)
        d_rec_int = d_rec.astype(jnp.int32)

        # bit errors = popcount of the 3-bit xor (one accumulator, one final sum)
        x = d_rec_int ^ d_int
        err_acc = err_acc + (x & 1) + ((x >> 1) & 1) + ((x >> 2) & 1)

        # packbits: place recovered symbol back into its field of the 24-bit group
        grp_rec = grp_rec + (d_rec_int << shift)

    # --- received bytes -> received image (same member-major layout) ---
    inv255 = 1.0 / 255.0
    r0 = ((grp_rec >> 16) & 255).astype(jnp.float32) * inv255
    r1 = ((grp_rec >> 8) & 255).astype(jnp.float32) * inv255
    r2 = (grp_rec & 255).astype(jnp.float32) * inv255
    img_out_ref[0, :, :] = r0
    img_out_ref[1, :, :] = r1
    img_out_ref[2, :, :] = r2

    # --- single reduction each for bit errors and L1 |diff|; lane-dense output ---
    err_total = jnp.sum(err_acc.astype(jnp.float32))
    l1_abs = jnp.abs(img[0] - r0) + jnp.abs(img[1] - r1) + jnp.abs(img[2] - r2)
    l1_total = jnp.sum(l1_abs)

    lane = lax.broadcasted_iota(jnp.int32, (1, 128), 1)
    stats_ref[...] = (jnp.where(lane == 0, err_total, 0.0)
                      + jnp.where(lane == 1, l1_total, 0.0))


def jpg_transmission_forward(input_image, snr_db, key):
    """Pallas re-implementation of JPGTransmission.forward numeric hot path.

    input_image: (C, H, W) float32 in [0, 1].
    Returns (recon_l1_loss, ber, received_image).
    """
    C, H, W = input_image.shape
    n_bytes = C * H * W
    assert n_bytes % (3 * 128) == 0, "shapes chosen so pad_len == 0 and lanes are dense"
    n_groups = n_bytes // 3            # 3 bytes = 24 bits = 8 QAM symbols
    g_rows = n_groups // 128
    s_rows = 8 * g_rows                # symbol rows (x128 lanes)
    n_bits = n_bytes * 8

    # byte-member-major layout: member m of 3-byte group g -> [m, g // 128, g % 128]
    img_perm = (input_image.astype(jnp.float32)
                .reshape(n_groups, 3).T.reshape(3, g_rows, 128))

    # channel randomness: Rayleigh h, complex AWGN at the requested SNR
    kh, kn = jax.random.split(key)
    hv = jax.random.normal(kh, (2,), dtype=jnp.float32) * jnp.sqrt(0.5)
    h_re, h_im = hv[0], hv[1]
    snr_lin = 10.0 ** (snr_db / 10.0)
    noise_std = jnp.sqrt(1.0 / (2.0 * snr_lin)).astype(jnp.float32)
    noise = jax.random.normal(kn, (2, s_rows, 128), dtype=jnp.float32) * noise_std

    denom = h_re * h_re + h_im * h_im
    # tiny floor keeps equalization finite for a near-zero Rayleigh draw
    inv_denom = 1.0 / jnp.maximum(denom, jnp.float32(1e-20))
    scal = jnp.stack([h_re, h_im, inv_denom]).astype(jnp.float32)

    kernel = functools.partial(_qam8_jpg_fused_kernel, g_rows=g_rows)
    out_img_perm, stats = pl.pallas_call(
        kernel,
        out_shape=(jax.ShapeDtypeStruct((3, g_rows, 128), jnp.float32),
                   jax.ShapeDtypeStruct((1, 128), jnp.float32)),
        in_specs=[pl.BlockSpec(memory_space=pltpu.MemorySpace.SMEM),   # scalars
                  pl.BlockSpec(memory_space=pltpu.MemorySpace.VMEM),   # image
                  pl.BlockSpec(memory_space=pltpu.MemorySpace.VMEM)],  # noise
        out_specs=(pl.BlockSpec(memory_space=pltpu.MemorySpace.VMEM),
                   pl.BlockSpec(memory_space=pltpu.MemorySpace.VMEM)),
    )(scal, img_perm, noise)

    ber = stats[0, 0] / jnp.float32(n_bits)
    recon_loss = stats[0, 1] / jnp.float32(n_bytes)      # nn.L1Loss() == mean |diff|
    received_image = out_img_perm.reshape(3, n_groups).T.reshape(C, H, W)

    # TODO(synk): perceptual loss via LLavaAnswerGenerationModel has no Pallas
    # equivalent; returning the module's L1 recon loss + BER instead.
    return recon_loss, ber, received_image


if __name__ == "__main__":
    key = jax.random.PRNGKey(0)
    k_img, k_chan = jax.random.split(key)

    C, H, W = 3, 16, 16
    input_image = jax.random.uniform(k_img, (C, H, W), dtype=jnp.float32)
    snr_db = 20.0  # args.SNR

    fwd = jax.jit(jpg_transmission_forward)
    recon_loss, ber, received = fwd(input_image, snr_db, k_chan)
    jax.block_until_ready((recon_loss, ber, received))

    # sanity: loss/BER finite, BER in [0,1], received image in range and right shape
    assert received.shape == (C, H, W)
    assert bool(jnp.isfinite(recon_loss)) and bool(jnp.isfinite(ber))
    assert 0.0 <= float(ber) <= 1.0
    assert float(jnp.min(received)) >= 0.0 and float(jnp.max(received)) <= 1.0
    print("KERNEL_OK")
</pallas_src>

<mosaic_0001>
module attributes {stable_mosaic.version = 11 : i64} {
  func.func @_qam8_jpg_fused_kernel(%arg0: memref<3xf32, #tpu.memory_space<smem>>, %arg1: memref<3x2x128xf32, #tpu.memory_space<vmem>>, %arg2: memref<2x16x128xf32, #tpu.memory_space<vmem>>, %arg3: memref<3x2x128xf32, #tpu.memory_space<vmem>>, %arg4: memref<1x128xf32, #tpu.memory_space<vmem>>) attributes {dimension_semantics = [], scalar_prefetch = 0 : i64, scratch_operands = 0 : i64, tpu.core_type = #tpu.core_type<tc>} {
    %c0 = arith.constant 0 : index
    %0 = memref.load %arg0[%c0] : memref<3xf32, #tpu.memory_space<smem>>
    %c1 = arith.constant 1 : index
    %1 = memref.load %arg0[%c1] : memref<3xf32, #tpu.memory_space<smem>>
    %c2 = arith.constant 2 : index
    %2 = memref.load %arg0[%c2] : memref<3xf32, #tpu.memory_space<smem>>
    %c0_0 = arith.constant 0 : index
    %c0_1 = arith.constant 0 : index
    %c0_2 = arith.constant 0 : index
    %3 = vector.load %arg1[%c0_0, %c0_1, %c0_2] : memref<3x2x128xf32, #tpu.memory_space<vmem>>, vector<3x2x128xf32>
    %c0_3 = arith.constant 0 : index
    %c0_4 = arith.constant 0 : index
    %c0_5 = arith.constant 0 : index
    %4 = vector.load %arg2[%c0_3, %c0_4, %c0_5] : memref<2x16x128xf32, #tpu.memory_space<vmem>>, vector<2x16x128xf32>
    %5 = vector.extract_strided_slice %3 {offsets = [0, 0, 0], sizes = [1, 2, 128], strides = [1, 1, 1]} : vector<3x2x128xf32> to vector<1x2x128xf32>
    %6 = vector.shape_cast %5 : vector<1x2x128xf32> to vector<2x128xf32>
    %cst = arith.constant 2.550000e+02 : f32
    %7 = vector.broadcast %cst : f32 to vector<2x128xf32>
    %8 = arith.mulf %6, %7 : vector<2x128xf32>
    %cst_6 = arith.constant 5.000000e-01 : f32
    %9 = vector.broadcast %cst_6 : f32 to vector<2x128xf32>
    %10 = arith.addf %8, %9 : vector<2x128xf32>
    %11 = math.floor %10 : vector<2x128xf32>
    %cst_7 = arith.constant 0.000000e+00 : f32
    %cst_8 = arith.constant 2.550000e+02 : f32
    %12 = vector.broadcast %cst_7 : f32 to vector<2x128xf32>
    %13 = arith.maximumf %12, %11 : vector<2x128xf32>
    %14 = vector.broadcast %cst_8 : f32 to vector<2x128xf32>
    %15 = arith.minimumf %14, %13 : vector<2x128xf32>
    %16 = arith.fptosi %15 : vector<2x128xf32> to vector<2x128xi32>
    %17 = vector.extract_strided_slice %3 {offsets = [1, 0, 0], sizes = [1, 2, 128], strides = [1, 1, 1]} : vector<3x2x128xf32> to vector<1x2x128xf32>
    %18 = vector.shape_cast %17 : vector<1x2x128xf32> to vector<2x128xf32>
    %cst_9 = arith.constant 2.550000e+02 : f32
    %19 = vector.broadcast %cst_9 : f32 to vector<2x128xf32>
    %20 = arith.mulf %18, %19 : vector<2x128xf32>
    %cst_10 = arith.constant 5.000000e-01 : f32
    %21 = vector.broadcast %cst_10 : f32 to vector<2x128xf32>
    %22 = arith.addf %20, %21 : vector<2x128xf32>
    %23 = math.floor %22 : vector<2x128xf32>
    %cst_11 = arith.constant 0.000000e+00 : f32
    %cst_12 = arith.constant 2.550000e+02 : f32
    %24 = vector.broadcast %cst_11 : f32 to vector<2x128xf32>
    %25 = arith.maximumf %24, %23 : vector<2x128xf32>
    %26 = vector.broadcast %cst_12 : f32 to vector<2x128xf32>
    %27 = arith.minimumf %26, %25 : vector<2x128xf32>
    %28 = arith.fptosi %27 : vector<2x128xf32> to vector<2x128xi32>
    %29 = vector.extract_strided_slice %3 {offsets = [2, 0, 0], sizes = [1, 2, 128], strides = [1, 1, 1]} : vector<3x2x128xf32> to vector<1x2x128xf32>
    %30 = vector.shape_cast %29 : vector<1x2x128xf32> to vector<2x128xf32>
    %cst_13 = arith.constant 2.550000e+02 : f32
    %31 = vector.broadcast %cst_13 : f32 to vector<2x128xf32>
    %32 = arith.mulf %30, %31 : vector<2x128xf32>
    %cst_14 = arith.constant 5.000000e-01 : f32
    %33 = vector.broadcast %cst_14 : f32 to vector<2x128xf32>
    %34 = arith.addf %32, %33 : vector<2x128xf32>
    %35 = math.floor %34 : vector<2x128xf32>
    %cst_15 = arith.constant 0.000000e+00 : f32
    %cst_16 = arith.constant 2.550000e+02 : f32
    %36 = vector.broadcast %cst_15 : f32 to vector<2x128xf32>
    %37 = arith.maximumf %36, %35 : vector<2x128xf32>
    %38 = vector.broadcast %cst_16 : f32 to vector<2x128xf32>
    %39 = arith.minimumf %38, %37 : vector<2x128xf32>
    %40 = arith.fptosi %39 : vector<2x128xf32> to vector<2x128xi32>
    %c16_i32 = arith.constant 16 : i32
    %41 = vector.broadcast %c16_i32 : i32 to vector<2x128xi32>
    %42 = arith.shli %16, %41 : vector<2x128xi32>
    %c8_i32 = arith.constant 8 : i32
    %43 = vector.broadcast %c8_i32 : i32 to vector<2x128xi32>
    %44 = arith.shli %28, %43 : vector<2x128xi32>
    %45 = arith.addi %42, %44 : vector<2x128xi32>
    %46 = arith.addi %45, %40 : vector<2x128xi32>
    %c0_i32 = arith.constant 0 : i32
    %47 = vector.broadcast %c0_i32 : i32 to vector<2x128xi32>
    %c0_i32_17 = arith.constant 0 : i32
    %48 = vector.broadcast %c0_i32_17 : i32 to vector<2x128xi32>
    %c21_i32 = arith.constant 21 : i32
    %49 = vector.broadcast %c21_i32 : i32 to vector<2x128xi32>
    %50 = arith.shrsi %46, %49 : vector<2x128xi32>
    %c7_i32 = arith.constant 7 : i32
    %51 = vector.broadcast %c7_i32 : i32 to vector<2x128xi32>
    %52 = arith.andi %50, %51 : vector<2x128xi32>
    %53 = arith.sitofp %52 : vector<2x128xi32> to vector<2x128xf32>
    %c5_i32 = arith.constant 5 : i32
    %54 = vector.broadcast %c5_i32 : i32 to vector<2x128xi32>
    %55 = arith.cmpi sge, %52, %54 : vector<2x128xi32>
    %c2_i32 = arith.constant 2 : i32
    %56 = vector.broadcast %c2_i32 : i32 to vector<2x128xi32>
    %57 = arith.cmpi sle, %52, %56 : vector<2x128xi32>
    %cst_18 = arith.constant 1.000000e+00 : f32
    %cst_19 = arith.constant 0.000000e+00 : f32
    %58 = vector.broadcast %cst_18 : f32 to vector<2x128xf32>
    %59 = vector.broadcast %cst_19 : f32 to vector<2x128xf32>
    %60 = arith.select %55, %58, %59 : vector<2x128xi1>, vector<2x128xf32>
    %cst_20 = arith.constant 1.000000e+00 : f32
    %cst_21 = arith.constant 0.000000e+00 : f32
    %61 = vector.broadcast %cst_20 : f32 to vector<2x128xf32>
    %62 = vector.broadcast %cst_21 : f32 to vector<2x128xf32>
    %63 = arith.select %57, %61, %62 : vector<2x128xi1>, vector<2x128xf32>
    %64 = arith.subf %60, %63 : vector<2x128xf32>
    %cst_22 = arith.constant 1.000000e+00 : f32
    %65 = vector.broadcast %cst_22 : f32 to vector<2x128xf32>
    %66 = arith.subf %53, %65 : vector<2x128xf32>
    %cst_23 = arith.constant 6.000000e+00 : f32
    %67 = vector.broadcast %cst_23 : f32 to vector<2x128xf32>
    %68 = arith.subf %53, %67 : vector<2x128xf32>
    %cst_24 = arith.constant 2.000000e+00 : f32
    %69 = vector.broadcast %cst_24 : f32 to vector<2x128xf32>
    %70 = arith.mulf %69, %53 : vector<2x128xf32>
    %cst_25 = arith.constant 7.000000e+00 : f32
    %71 = vector.broadcast %cst_25 : f32 to vector<2x128xf32>
    %72 = arith.subf %70, %71 : vector<2x128xf32>
    %73 = arith.select %55, %68, %72 : vector<2x128xi1>, vector<2x128xf32>
    %74 = arith.select %57, %66, %73 : vector<2x128xi1>, vector<2x128xf32>
    %75 = vector.extract_strided_slice %4 {offsets = [0, 0, 0], sizes = [1, 2, 128], strides = [1, 1, 1]} : vector<2x16x128xf32> to vector<1x2x128xf32>
    %76 = vector.shape_cast %75 : vector<1x2x128xf32> to vector<2x128xf32>
    %77 = vector.extract_strided_slice %4 {offsets = [1, 0, 0], sizes = [1, 2, 128], strides = [1, 1, 1]} : vector<2x16x128xf32> to vector<1x2x128xf32>
    %78 = vector.shape_cast %77 : vector<1x2x128xf32> to vector<2x128xf32>
    %79 = vector.broadcast %0 : f32 to vector<2x128xf32>
    %80 = arith.mulf %79, %64 : vector<2x128xf32>
    %81 = vector.broadcast %1 : f32 to vector<2x128xf32>
    %82 = arith.mulf %81, %74 : vector<2x128xf32>
    %83 = arith.subf %80, %82 : vector<2x128xf32>
    %84 = arith.addf %83, %76 : vector<2x128xf32>
    %85 = vector.broadcast %0 : f32 to vector<2x128xf32>
    %86 = arith.mulf %85, %74 : vector<2x128xf32>
    %87 = vector.broadcast %1 : f32 to vector<2x128xf32>
    %88 = arith.mulf %87, %64 : vector<2x128xf32>
    %89 = arith.addf %86, %88 : vector<2x128xf32>
    %90 = arith.addf %89, %78 : vector<2x128xf32>
    %91 = vector.broadcast %0 : f32 to vector<2x128xf32>
    %92 = arith.mulf %84, %91 : vector<2x128xf32>
    %93 = vector.broadcast %1 : f32 to vector<2x128xf32>
    %94 = arith.mulf %90, %93 : vector<2x128xf32>
    %95 = arith.addf %92, %94 : vector<2x128xf32>
    %96 = vector.broadcast %2 : f32 to vector<2x128xf32>
    %97 = arith.mulf %95, %96 : vector<2x128xf32>
    %98 = vector.broadcast %0 : f32 to vector<2x128xf32>
    %99 = arith.mulf %90, %98 : vector<2x128xf32>
    %100 = vector.broadcast %1 : f32 to vector<2x128xf32>
    %101 = arith.mulf %84, %100 : vector<2x128xf32>
    %102 = arith.subf %99, %101 : vector<2x128xf32>
    %103 = vector.broadcast %2 : f32 to vector<2x128xf32>
    %104 = arith.mulf %102, %103 : vector<2x128xf32>
    %cst_26 = arith.constant 5.000000e-01 : f32
    %105 = vector.broadcast %cst_26 : f32 to vector<2x128xf32>
    %106 = arith.addf %97, %105 : vector<2x128xf32>
    %107 = math.floor %106 : vector<2x128xf32>
    %cst_27 = arith.constant -1.000000e+00 : f32
    %cst_28 = arith.constant 1.000000e+00 : f32
    %108 = vector.broadcast %cst_27 : f32 to vector<2x128xf32>
    %109 = arith.maximumf %108, %107 : vector<2x128xf32>
    %110 = vector.broadcast %cst_28 : f32 to vector<2x128xf32>
    %111 = arith.minimumf %110, %109 : vector<2x128xf32>
    %cst_29 = arith.constant 5.000000e-01 : f32
    %112 = vector.broadcast %cst_29 : f32 to vector<2x128xf32>
    %113 = arith.addf %104, %112 : vector<2x128xf32>
    %114 = math.floor %113 : vector<2x128xf32>
    %cst_30 = arith.constant -1.000000e+00 : f32
    %cst_31 = arith.constant 1.000000e+00 : f32
    %115 = vector.broadcast %cst_30 : f32 to vector<2x128xf32>
    %116 = arith.maximumf %115, %114 : vector<2x128xf32>
    %117 = vector.broadcast %cst_31 : f32 to vector<2x128xf32>
    %118 = arith.minimumf %117, %116 : vector<2x128xf32>
    %cst_32 = arith.constant 0.000000e+00 : f32
    %119 = vector.broadcast %cst_32 : f32 to vector<2x128xf32>
    %120 = arith.cmpf oeq, %111, %119 : vector<2x128xf32>
    %cst_33 = arith.constant 0.000000e+00 : f32
    %121 = vector.broadcast %cst_33 : f32 to vector<2x128xf32>
    %122 = arith.cmpf oeq, %118, %121 : vector<2x128xf32>
    %123 = arith.andi %120, %122 : vector<2x128xi1>
    %124 = math.absf %97 : vector<2x128xf32>
    %125 = math.absf %104 : vector<2x128xf32>
    %126 = arith.cmpf oge, %124, %125 : vector<2x128xf32>
    %127 = arith.andi %123, %126 : vector<2x128xi1>
    %cst_34 = arith.constant 0.000000e+00 : f32
    %128 = vector.broadcast %cst_34 : f32 to vector<2x128xf32>
    %129 = arith.cmpf oge, %97, %128 : vector<2x128xf32>
    %cst_35 = arith.constant 1.000000e+00 : f32
    %cst_36 = arith.constant -1.000000e+00 : f32
    %130 = vector.broadcast %cst_35 : f32 to vector<2x128xf32>
    %131 = vector.broadcast %cst_36 : f32 to vector<2x128xf32>
    %132 = arith.select %129, %130, %131 : vector<2x128xi1>, vector<2x128xf32>
    %133 = arith.select %127, %132, %111 : vector<2x128xi1>, vector<2x128xf32>
    %cst_37 = arith.constant dense<true> : vector<2x128xi1>
    %134 = arith.xori %126, %cst_37 : vector<2x128xi1>
    %135 = arith.andi %123, %134 : vector<2x128xi1>
    %cst_38 = arith.constant 0.000000e+00 : f32
    %136 = vector.broadcast %cst_38 : f32 to vector<2x128xf32>
    %137 = arith.cmpf oge, %104, %136 : vector<2x128xf32>
    %cst_39 = arith.constant 1.000000e+00 : f32
    %cst_40 = arith.constant -1.000000e+00 : f32
    %138 = vector.broadcast %cst_39 : f32 to vector<2x128xf32>
    %139 = vector.broadcast %cst_40 : f32 to vector<2x128xf32>
    %140 = arith.select %137, %138, %139 : vector<2x128xi1>, vector<2x128xf32>
    %141 = arith.select %135, %140, %118 : vector<2x128xi1>, vector<2x128xf32>
    %cst_41 = arith.constant 2.500000e+00 : f32
    %142 = vector.broadcast %cst_41 : f32 to vector<2x128xf32>
    %143 = arith.mulf %142, %133 : vector<2x128xf32>
    %cst_42 = arith.constant 3.500000e+00 : f32
    %144 = vector.broadcast %cst_42 : f32 to vector<2x128xf32>
    %145 = arith.addf %144, %143 : vector<2x128xf32>
    %cst_43 = arith.constant 5.000000e-01 : f32
    %146 = vector.broadcast %cst_43 : f32 to vector<2x128xf32>
    %147 = arith.mulf %146, %133 : vector<2x128xf32>
    %148 = arith.mulf %147, %133 : vector<2x128xf32>
    %cst_44 = arith.constant 5.000000e-01 : f32
    %149 = vector.broadcast %cst_44 : f32 to vector<2x128xf32>
    %150 = arith.addf %149, %148 : vector<2x128xf32>
    %151 = arith.mulf %141, %150 : vector<2x128xf32>
    %152 = arith.addf %145, %151 : vector<2x128xf32>
    %153 = arith.fptosi %152 : vector<2x128xf32> to vector<2x128xi32>
    %154 = arith.xori %153, %52 : vector<2x128xi32>
    %c1_i32 = arith.constant 1 : i32
    %155 = vector.broadcast %c1_i32 : i32 to vector<2x128xi32>
    %156 = arith.andi %154, %155 : vector<2x128xi32>
    %157 = arith.addi %47, %156 : vector<2x128xi32>
    %c1_i32_45 = arith.constant 1 : i32
    %158 = vector.broadcast %c1_i32_45 : i32 to vector<2x128xi32>
    %159 = arith.shrsi %154, %158 : vector<2x128xi32>
    %c1_i32_46 = arith.constant 1 : i32
    %160 = vector.broadcast %c1_i32_46 : i32 to vector<2x128xi32>
    %161 = arith.andi %159, %160 : vector<2x128xi32>
    %162 = arith.addi %157, %161 : vector<2x128xi32>
    %c2_i32_47 = arith.constant 2 : i32
    %163 = vector.broadcast %c2_i32_47 : i32 to vector<2x128xi32>
    %164 = arith.shrsi %154, %163 : vector<2x128xi32>
    %c1_i32_48 = arith.constant 1 : i32
    %165 = vector.broadcast %c1_i32_48 : i32 to vector<2x128xi32>
    %166 = arith.andi %164, %165 : vector<2x128xi32>
    %167 = arith.addi %162, %166 : vector<2x128xi32>
    %c21_i32_49 = arith.constant 21 : i32
    %168 = vector.broadcast %c21_i32_49 : i32 to vector<2x128xi32>
    %169 = arith.shli %153, %168 : vector<2x128xi32>
    %170 = arith.addi %48, %169 : vector<2x128xi32>
    %c18_i32 = arith.constant 18 : i32
    %171 = vector.broadcast %c18_i32 : i32 to vector<2x128xi32>
    %172 = arith.shrsi %46, %171 : vector<2x128xi32>
    %c7_i32_50 = arith.constant 7 : i32
    %173 = vector.broadcast %c7_i32_50 : i32 to vector<2x128xi32>
    %174 = arith.andi %172, %173 : vector<2x128xi32>
    %175 = arith.sitofp %174 : vector<2x128xi32> to vector<2x128xf32>
    %c5_i32_51 = arith.constant 5 : i32
    %176 = vector.broadcast %c5_i32_51 : i32 to vector<2x128xi32>
    %177 = arith.cmpi sge, %174, %176 : vector<2x128xi32>
    %c2_i32_52 = arith.constant 2 : i32
    %178 = vector.broadcast %c2_i32_52 : i32 to vector<2x128xi32>
    %179 = arith.cmpi sle, %174, %178 : vector<2x128xi32>
    %cst_53 = arith.constant 1.000000e+00 : f32
    %cst_54 = arith.constant 0.000000e+00 : f32
    %180 = vector.broadcast %cst_53 : f32 to vector<2x128xf32>
    %181 = vector.broadcast %cst_54 : f32 to vector<2x128xf32>
    %182 = arith.select %177, %180, %181 : vector<2x128xi1>, vector<2x128xf32>
    %cst_55 = arith.constant 1.000000e+00 : f32
    %cst_56 = arith.constant 0.000000e+00 : f32
    %183 = vector.broadcast %cst_55 : f32 to vector<2x128xf32>
    %184 = vector.broadcast %cst_56 : f32 to vector<2x128xf32>
    %185 = arith.select %179, %183, %184 : vector<2x128xi1>, vector<2x128xf32>
    %186 = arith.subf %182, %185 : vector<2x128xf32>
    %cst_57 = arith.constant 1.000000e+00 : f32
    %187 = vector.broadcast %cst_57 : f32 to vector<2x128xf32>
    %188 = arith.subf %175, %187 : vector<2x128xf32>
    %cst_58 = arith.constant 6.000000e+00 : f32
    %189 = vector.broadcast %cst_58 : f32 to vector<2x128xf32>
    %190 = arith.subf %175, %189 : vector<2x128xf32>
    %cst_59 = arith.constant 2.000000e+00 : f32
    %191 = vector.broadcast %cst_59 : f32 to vector<2x128xf32>
    %192 = arith.mulf %191, %175 : vector<2x128xf32>
    %cst_60 = arith.constant 7.000000e+00 : f32
    %193 = vector.broadcast %cst_60 : f32 to vector<2x128xf32>
    %194 = arith.subf %192, %193 : vector<2x128xf32>
    %195 = arith.select %177, %190, %194 : vector<2x128xi1>, vector<2x128xf32>
    %196 = arith.select %179, %188, %195 : vector<2x128xi1>, vector<2x128xf32>
    %197 = vector.extract_strided_slice %4 {offsets = [0, 2, 0], sizes = [1, 2, 128], strides = [1, 1, 1]} : vector<2x16x128xf32> to vector<1x2x128xf32>
    %198 = vector.shape_cast %197 : vector<1x2x128xf32> to vector<2x128xf32>
    %199 = vector.extract_strided_slice %4 {offsets = [1, 2, 0], sizes = [1, 2, 128], strides = [1, 1, 1]} : vector<2x16x128xf32> to vector<1x2x128xf32>
    %200 = vector.shape_cast %199 : vector<1x2x128xf32> to vector<2x128xf32>
    %201 = vector.broadcast %0 : f32 to vector<2x128xf32>
    %202 = arith.mulf %201, %186 : vector<2x128xf32>
    %203 = vector.broadcast %1 : f32 to vector<2x128xf32>
    %204 = arith.mulf %203, %196 : vector<2x128xf32>
    %205 = arith.subf %202, %204 : vector<2x128xf32>
    %206 = arith.addf %205, %198 : vector<2x128xf32>
    %207 = vector.broadcast %0 : f32 to vector<2x128xf32>
    %208 = arith.mulf %207, %196 : vector<2x128xf32>
    %209 = vector.broadcast %1 : f32 to vector<2x128xf32>
    %210 = arith.mulf %209, %186 : vector<2x128xf32>
    %211 = arith.addf %208, %210 : vector<2x128xf32>
    %212 = arith.addf %211, %200 : vector<2x128xf32>
    %213 = vector.broadcast %0 : f32 to vector<2x128xf32>
    %214 = arith.mulf %206, %213 : vector<2x128xf32>
    %215 = vector.broadcast %1 : f32 to vector<2x128xf32>
    %216 = arith.mulf %212, %215 : vector<2x128xf32>
    %217 = arith.addf %214, %216 : vector<2x128xf32>
    %218 = vector.broadcast %2 : f32 to vector<2x128xf32>
    %219 = arith.mulf %217, %218 : vector<2x128xf32>
    %220 = vector.broadcast %0 : f32 to vector<2x128xf32>
    %221 = arith.mulf %212, %220 : vector<2x128xf32>
    %222 = vector.broadcast %1 : f32 to vector<2x128xf32>
    %223 = arith.mulf %206, %222 : vector<2x128xf32>
    %224 = arith.subf %221, %223 : vector<2x128xf32>
    %225 = vector.broadcast %2 : f32 to vector<2x128xf32>
    %226 = arith.mulf %224, %225 : vector<2x128xf32>
    %cst_61 = arith.constant 5.000000e-01 : f32
    %227 = vector.broadcast %cst_61 : f32 to vector<2x128xf32>
    %228 = arith.addf %219, %227 : vector<2x128xf32>
    %229 = math.floor %228 : vector<2x128xf32>
    %cst_62 = arith.constant -1.000000e+00 : f32
    %cst_63 = arith.constant 1.000000e+00 : f32
    %230 = vector.broadcast %cst_62 : f32 to vector<2x128xf32>
    %231 = arith.maximumf %230, %229 : vector<2x128xf32>
    %232 = vector.broadcast %cst_63 : f32 to vector<2x128xf32>
    %233 = arith.minimumf %232, %231 : vector<2x128xf32>
    %cst_64 = arith.constant 5.000000e-01 : f32
    %234 = vector.broadcast %cst_64 : f32 to vector<2x128xf32>
    %235 = arith.addf %226, %234 : vector<2x128xf32>
    %236 = math.floor %235 : vector<2x128xf32>
    %cst_65 = arith.constant -1.000000e+00 : f32
    %cst_66 = arith.constant 1.000000e+00 : f32
    %237 = vector.broadcast %cst_65 : f32 to vector<2x128xf32>
    %238 = arith.maximumf %237, %236 : vector<2x128xf32>
    %239 = vector.broadcast %cst_66 : f32 to vector<2x128xf32>
    %240 = arith.minimumf %239, %238 : vector<2x128xf32>
    %cst_67 = arith.constant 0.000000e+00 : f32
    %241 = vector.broadcast %cst_67 : f32 to vector<2x128xf32>
    %242 = arith.cmpf oeq, %233, %241 : vector<2x128xf32>
    %cst_68 = arith.constant 0.000000e+00 : f32
    %243 = vector.broadcast %cst_68 : f32 to vector<2x128xf32>
    %244 = arith.cmpf oeq, %240, %243 : vector<2x128xf32>
    %245 = arith.andi %242, %244 : vector<2x128xi1>
    %246 = math.absf %219 : vector<2x128xf32>
    %247 = math.absf %226 : vector<2x128xf32>
    %248 = arith.cmpf oge, %246, %247 : vector<2x128xf32>
    %249 = arith.andi %245, %248 : vector<2x128xi1>
    %cst_69 = arith.constant 0.000000e+00 : f32
    %250 = vector.broadcast %cst_69 : f32 to vector<2x128xf32>
    %251 = arith.cmpf oge, %219, %250 : vector<2x128xf32>
    %cst_70 = arith.constant 1.000000e+00 : f32
    %cst_71 = arith.constant -1.000000e+00 : f32
    %252 = vector.broadcast %cst_70 : f32 to vector<2x128xf32>
    %253 = vector.broadcast %cst_71 : f32 to vector<2x128xf32>
    %254 = arith.select %251, %252, %253 : vector<2x128xi1>, vector<2x128xf32>
    %255 = arith.select %249, %254, %233 : vector<2x128xi1>, vector<2x128xf32>
    %cst_72 = arith.constant dense<true> : vector<2x128xi1>
    %256 = arith.xori %248, %cst_72 : vector<2x128xi1>
    %257 = arith.andi %245, %256 : vector<2x128xi1>
    %cst_73 = arith.constant 0.000000e+00 : f32
    %258 = vector.broadcast %cst_73 : f32 to vector<2x128xf32>
    %259 = arith.cmpf oge, %226, %258 : vector<2x128xf32>
    %cst_74 = arith.constant 1.000000e+00 : f32
    %cst_75 = arith.constant -1.000000e+00 : f32
    %260 = vector.broadcast %cst_74 : f32 to vector<2x128xf32>
    %261 = vector.broadcast %cst_75 : f32 to vector<2x128xf32>
    %262 = arith.select %259, %260, %261 : vector<2x128xi1>, vector<2x128xf32>
    %263 = arith.select %257, %262, %240 : vector<2x128xi1>, vector<2x128xf32>
    %cst_76 = arith.constant 2.500000e+00 : f32
    %264 = vector.broadcast %cst_76 : f32 to vector<2x128xf32>
    %265 = arith.mulf %264, %255 : vector<2x128xf32>
    %cst_77 = arith.constant 3.500000e+00 : f32
    %266 = vector.broadcast %cst_77 : f32 to vector<2x128xf32>
    %267 = arith.addf %266, %265 : vector<2x128xf32>
    %cst_78 = arith.constant 5.000000e-01 : f32
    %268 = vector.broadcast %cst_78 : f32 to vector<2x128xf32>
    %269 = arith.mulf %268, %255 : vector<2x128xf32>
    %270 = arith.mulf %269, %255 : vector<2x128xf32>
    %cst_79 = arith.constant 5.000000e-01 : f32
    %271 = vector.broadcast %cst_79 : f32 to vector<2x128xf32>
    %272 = arith.addf %271, %270 : vector<2x128xf32>
    %273 = arith.mulf %263, %272 : vector<2x128xf32>
    %274 = arith.addf %267, %273 : vector<2x128xf32>
    %275 = arith.fptosi %274 : vector<2x128xf32> to vector<2x128xi32>
    %276 = arith.xori %275, %174 : vector<2x128xi32>
    %c1_i32_80 = arith.constant 1 : i32
    %277 = vector.broadcast %c1_i32_80 : i32 to vector<2x128xi32>
    %278 = arith.andi %276, %277 : vector<2x128xi32>
    %279 = arith.addi %167, %278 : vector<2x128xi32>
    %c1_i32_81 = arith.constant 1 : i32
    %280 = vector.broadcast %c1_i32_81 : i32 to vector<2x128xi32>
    %281 = arith.shrsi %276, %280 : vector<2x128xi32>
    %c1_i32_82 = arith.constant 1 : i32
    %282 = vector.broadcast %c1_i32_82 : i32 to vector<2x128xi32>
    %283 = arith.andi %281, %282 : vector<2x128xi32>
    %284 = arith.addi %279, %283 : vector<2x128xi32>
    %c2_i32_83 = arith.constant 2 : i32
    %285 = vector.broadcast %c2_i32_83 : i32 to vector<2x128xi32>
    %286 = arith.shrsi %276, %285 : vector<2x128xi32>
    %c1_i32_84 = arith.constant 1 : i32
    %287 = vector.broadcast %c1_i32_84 : i32 to vector<2x128xi32>
    %288 = arith.andi %286, %287 : vector<2x128xi32>
    %289 = arith.addi %284, %288 : vector<2x128xi32>
    %c18_i32_85 = arith.constant 18 : i32
    %290 = vector.broadcast %c18_i32_85 : i32 to vector<2x128xi32>
    %291 = arith.shli %275, %290 : vector<2x128xi32>
    %292 = arith.addi %170, %291 : vector<2x128xi32>
    %c15_i32 = arith.constant 15 : i32
    %293 = vector.broadcast %c15_i32 : i32 to vector<2x128xi32>
    %294 = arith.shrsi %46, %293 : vector<2x128xi32>
    %c7_i32_86 = arith.constant 7 : i32
    %295 = vector.broadcast %c7_i32_86 : i32 to vector<2x128xi32>
    %296 = arith.andi %294, %295 : vector<2x128xi32>
    %297 = arith.sitofp %296 : vector<2x128xi32> to vector<2x128xf32>
    %c5_i32_87 = arith.constant 5 : i32
    %298 = vector.broadcast %c5_i32_87 : i32 to vector<2x128xi32>
    %299 = arith.cmpi sge, %296, %298 : vector<2x128xi32>
    %c2_i32_88 = arith.constant 2 : i32
    %300 = vector.broadcast %c2_i32_88 : i32 to vector<2x128xi32>
    %301 = arith.cmpi sle, %296, %300 : vector<2x128xi32>
    %cst_89 = arith.constant 1.000000e+00 : f32
    %cst_90 = arith.constant 0.000000e+00 : f32
    %302 = vector.broadcast %cst_89 : f32 to vector<2x128xf32>
    %303 = vector.broadcast %cst_90 : f32 to vector<2x128xf32>
    %304 = arith.select %299, %302, %303 : vector<2x128xi1>, vector<2x128xf32>
    %cst_91 = arith.constant 1.000000e+00 : f32
    %cst_92 = arith.constant 0.000000e+00 : f32
    %305 = vector.broadcast %cst_91 : f32 to vector<2x128xf32>
    %306 = vector.broadcast %cst_92 : f32 to vector<2x128xf32>
    %307 = arith.select %301, %305, %306 : vector<2x128xi1>, vector<2x128xf32>
    %308 = arith.subf %304, %307 : vector<2x128xf32>
    %cst_93 = arith.constant 1.000000e+00 : f32
    %309 = vector.broadcast %cst_93 : f32 to vector<2x128xf32>
    %310 = arith.subf %297, %309 : vector<2x128xf32>
    %cst_94 = arith.constant 6.000000e+00 : f32
    %311 = vector.broadcast %cst_94 : f32 to vector<2x128xf32>
    %312 = arith.subf %297, %311 : vector<2x128xf32>
    %cst_95 = arith.constant 2.000000e+00 : f32
    %313 = vector.broadcast %cst_95 : f32 to vector<2x128xf32>
    %314 = arith.mulf %313, %297 : vector<2x128xf32>
    %cst_96 = arith.constant 7.000000e+00 : f32
    %315 = vector.broadcast %cst_96 : f32 to vector<2x128xf32>
    %316 = arith.subf %314, %315 : vector<2x128xf32>
    %317 = arith.select %299, %312, %316 : vector<2x128xi1>, vector<2x128xf32>
    %318 = arith.select %301, %310, %317 : vector<2x128xi1>, vector<2x128xf32>
    %319 = vector.extract_strided_slice %4 {offsets = [0, 4, 0], sizes = [1, 2, 128], strides = [1, 1, 1]} : vector<2x16x128xf32> to vector<1x2x128xf32>
    %320 = vector.shape_cast %319 : vector<1x2x128xf32> to vector<2x128xf32>
    %321 = vector.extract_strided_slice %4 {offsets = [1, 4, 0], sizes = [1, 2, 128], strides = [1, 1, 1]} : vector<2x16x128xf32> to vector<1x2x128xf32>
    %322 = vector.shape_cast %321 : vector<1x2x128xf32> to vector<2x128xf32>
    %323 = vector.broadcast %0 : f32 to vector<2x128xf32>
    %324 = arith.mulf %323, %308 : vector<2x128xf32>
    %325 = vector.broadcast %1 : f32 to vector<2x128xf32>
    %326 = arith.mulf %325, %318 : vector<2x128xf32>
    %327 = arith.subf %324, %326 : vector<2x128xf32>
    %328 = arith.addf %327, %320 : vector<2x128xf32>
    %329 = vector.broadcast %0 : f32 to vector<2x128xf32>
    %330 = arith.mulf %329, %318 : vector<2x128xf32>
    %331 = vector.broadcast %1 : f32 to vector<2x128xf32>
    %332 = arith.mulf %331, %308 : vector<2x128xf32>
    %333 = arith.addf %330, %332 : vector<2x128xf32>
    %334 = arith.addf %333, %322 : vector<2x128xf32>
    %335 = vector.broadcast %0 : f32 to vector<2x128xf32>
    %336 = arith.mulf %328, %335 : vector<2x128xf32>
    %337 = vector.broadcast %1 : f32 to vector<2x128xf32>
    %338 = arith.mulf %334, %337 : vector<2x128xf32>
    %339 = arith.addf %336, %338 : vector<2x128xf32>
    %340 = vector.broadcast %2 : f32 to vector<2x128xf32>
    %341 = arith.mulf %339, %340 : vector<2x128xf32>
    %342 = vector.broadcast %0 : f32 to vector<2x128xf32>
    %343 = arith.mulf %334, %342 : vector<2x128xf32>
    %344 = vector.broadcast %1 : f32 to vector<2x128xf32>
    %345 = arith.mulf %328, %344 : vector<2x128xf32>
    %346 = arith.subf %343, %345 : vector<2x128xf32>
    %347 = vector.broadcast %2 : f32 to vector<2x128xf32>
    %348 = arith.mulf %346, %347 : vector<2x128xf32>
    %cst_97 = arith.constant 5.000000e-01 : f32
    %349 = vector.broadcast %cst_97 : f32 to vector<2x128xf32>
    %350 = arith.addf %341, %349 : vector<2x128xf32>
    %351 = math.floor %350 : vector<2x128xf32>
    %cst_98 = arith.constant -1.000000e+00 : f32
    %cst_99 = arith.constant 1.000000e+00 : f32
    %352 = vector.broadcast %cst_98 : f32 to vector<2x128xf32>
    %353 = arith.maximumf %352, %351 : vector<2x128xf32>
    %354 = vector.broadcast %cst_99 : f32 to vector<2x128xf32>
    %355 = arith.minimumf %354, %353 : vector<2x128xf32>
    %cst_100 = arith.constant 5.000000e-01 : f32
    %356 = vector.broadcast %cst_100 : f32 to vector<2x128xf32>
    %357 = arith.addf %348, %356 : vector<2x128xf32>
    %358 = math.floor %357 : vector<2x128xf32>
    %cst_101 = arith.constant -1.000000e+00 : f32
    %cst_102 = arith.constant 1.000000e+00 : f32
    %359 = vector.broadcast %cst_101 : f32 to vector<2x128xf32>
    %360 = arith.maximumf %359, %358 : vector<2x128xf32>
    %361 = vector.broadcast %cst_102 : f32 to vector<2x128xf32>
    %362 = arith.minimumf %361, %360 : vector<2x128xf32>
    %cst_103 = arith.constant 0.000000e+00 : f32
    %363 = vector.broadcast %cst_103 : f32 to vector<2x128xf32>
    %364 = arith.cmpf oeq, %355, %363 : vector<2x128xf32>
    %cst_104 = arith.constant 0.000000e+00 : f32
    %365 = vector.broadcast %cst_104 : f32 to vector<2x128xf32>
    %366 = arith.cmpf oeq, %362, %365 : vector<2x128xf32>
    %367 = arith.andi %364, %366 : vector<2x128xi1>
    %368 = math.absf %341 : vector<2x128xf32>
    %369 = math.absf %348 : vector<2x128xf32>
    %370 = arith.cmpf oge, %368, %369 : vector<2x128xf32>
    %371 = arith.andi %367, %370 : vector<2x128xi1>
    %cst_105 = arith.constant 0.000000e+00 : f32
    %372 = vector.broadcast %cst_105 : f32 to vector<2x128xf32>
    %373 = arith.cmpf oge, %341, %372 : vector<2x128xf32>
    %cst_106 = arith.constant 1.000000e+00 : f32
    %cst_107 = arith.constant -1.000000e+00 : f32
    %374 = vector.broadcast %cst_106 : f32 to vector<2x128xf32>
    %375 = vector.broadcast %cst_107 : f32 to vector<2x128xf32>
    %376 = arith.select %373, %374, %375 : vector<2x128xi1>, vector<2x128xf32>
    %377 = arith.select %371, %376, %355 : vector<2x128xi1>, vector<2x128xf32>
    %cst_108 = arith.constant dense<true> : vector<2x128xi1>
    %378 = arith.xori %370, %cst_108 : vector<2x128xi1>
    %379 = arith.andi %367, %378 : vector<2x128xi1>
    %cst_109 = arith.constant 0.000000e+00 : f32
    %380 = vector.broadcast %cst_109 : f32 to vector<2x128xf32>
    %381 = arith.cmpf oge, %348, %380 : vector<2x128xf32>
    %cst_110 = arith.constant 1.000000e+00 : f32
    %cst_111 = arith.constant -1.000000e+00 : f32
    %382 = vector.broadcast %cst_110 : f32 to vector<2x128xf32>
    %383 = vector.broadcast %cst_111 : f32 to vector<2x128xf32>
    %384 = arith.select %381, %382, %383 : vector<2x128xi1>, vector<2x128xf32>
    %385 = arith.select %379, %384, %362 : vector<2x128xi1>, vector<2x128xf32>
    %cst_112 = arith.constant 2.500000e+00 : f32
    %386 = vector.broadcast %cst_112 : f32 to vector<2x128xf32>
    %387 = arith.mulf %386, %377 : vector<2x128xf32>
    %cst_113 = arith.constant 3.500000e+00 : f32
    %388 = vector.broadcast %cst_113 : f32 to vector<2x128xf32>
    %389 = arith.addf %388, %387 : vector<2x128xf32>
    %cst_114 = arith.constant 5.000000e-01 : f32
    %390 = vector.broadcast %cst_114 : f32 to vector<2x128xf32>
    %391 = arith.mulf %390, %377 : vector<2x128xf32>
    %392 = arith.mulf %391, %377 : vector<2x128xf32>
    %cst_115 = arith.constant 5.000000e-01 : f32
    %393 = vector.broadcast %cst_115 : f32 to vector<2x128xf32>
    %394 = arith.addf %393, %392 : vector<2x128xf32>
    %395 = arith.mulf %385, %394 : vector<2x128xf32>
    %396 = arith.addf %389, %395 : vector<2x128xf32>
    %397 = arith.fptosi %396 : vector<2x128xf32> to vector<2x128xi32>
    %398 = arith.xori %397, %296 : vector<2x128xi32>
    %c1_i32_116 = arith.constant 1 : i32
    %399 = vector.broadcast %c1_i32_116 : i32 to vector<2x128xi32>
    %400 = arith.andi %398, %399 : vector<2x128xi32>
    %401 = arith.addi %289, %400 : vector<2x128xi32>
    %c1_i32_117 = arith.constant 1 : i32
    %402 = vector.broadcast %c1_i32_117 : i32 to vector<2x128xi32>
    %403 = arith.shrsi %398, %402 : vector<2x128xi32>
    %c1_i32_118 = arith.constant 1 : i32
    %404 = vector.broadcast %c1_i32_118 : i32 to vector<2x128xi32>
    %405 = arith.andi %403, %404 : vector<2x128xi32>
    %406 = arith.addi %401, %405 : vector<2x128xi32>
    %c2_i32_119 = arith.constant 2 : i32
    %407 = vector.broadcast %c2_i32_119 : i32 to vector<2x128xi32>
    %408 = arith.shrsi %398, %407 : vector<2x128xi32>
    %c1_i32_120 = arith.constant 1 : i32
    %409 = vector.broadcast %c1_i32_120 : i32 to vector<2x128xi32>
    %410 = arith.andi %408, %409 : vector<2x128xi32>
    %411 = arith.addi %406, %410 : vector<2x128xi32>
    %c15_i32_121 = arith.constant 15 : i32
    %412 = vector.broadcast %c15_i32_121 : i32 to vector<2x128xi32>
    %413 = arith.shli %397, %412 : vector<2x128xi32>
    %414 = arith.addi %292, %413 : vector<2x128xi32>
    %c12_i32 = arith.constant 12 : i32
    %415 = vector.broadcast %c12_i32 : i32 to vector<2x128xi32>
    %416 = arith.shrsi %46, %415 : vector<2x128xi32>
    %c7_i32_122 = arith.constant 7 : i32
    %417 = vector.broadcast %c7_i32_122 : i32 to vector<2x128xi32>
    %418 = arith.andi %416, %417 : vector<2x128xi32>
    %419 = arith.sitofp %418 : vector<2x128xi32> to vector<2x128xf32>
    %c5_i32_123 = arith.constant 5 : i32
    %420 = vector.broadcast %c5_i32_123 : i32 to vector<2x128xi32>
    %421 = arith.cmpi sge, %418, %420 : vector<2x128xi32>
    %c2_i32_124 = arith.constant 2 : i32
    %422 = vector.broadcast %c2_i32_124 : i32 to vector<2x128xi32>
    %423 = arith.cmpi sle, %418, %422 : vector<2x128xi32>
    %cst_125 = arith.constant 1.000000e+00 : f32
    %cst_126 = arith.constant 0.000000e+00 : f32
    %424 = vector.broadcast %cst_125 : f32 to vector<2x128xf32>
    %425 = vector.broadcast %cst_126 : f32 to vector<2x128xf32>
    %426 = arith.select %421, %424, %425 : vector<2x128xi1>, vector<2x128xf32>
    %cst_127 = arith.constant 1.000000e+00 : f32
    %cst_128 = arith.constant 0.000000e+00 : f32
    %427 = vector.broadcast %cst_127 : f32 to vector<2x128xf32>
    %428 = vector.broadcast %cst_128 : f32 to vector<2x128xf32>
    %429 = arith.select %423, %427, %428 : vector<2x128xi1>, vector<2x128xf32>
    %430 = arith.subf %426, %429 : vector<2x128xf32>
    %cst_129 = arith.constant 1.000000e+00 : f32
    %431 = vector.broadcast %cst_129 : f32 to vector<2x128xf32>
    %432 = arith.subf %419, %431 : vector<2x128xf32>
    %cst_130 = arith.constant 6.000000e+00 : f32
    %433 = vector.broadcast %cst_130 : f32 to vector<2x128xf32>
    %434 = arith.subf %419, %433 : vector<2x128xf32>
    %cst_131 = arith.constant 2.000000e+00 : f32
    %435 = vector.broadcast %cst_131 : f32 to vector<2x128xf32>
    %436 = arith.mulf %435, %419 : vector<2x128xf32>
    %cst_132 = arith.constant 7.000000e+00 : f32
    %437 = vector.broadcast %cst_132 : f32 to vector<2x128xf32>
    %438 = arith.subf %436, %437 : vector<2x128xf32>
    %439 = arith.select %421, %434, %438 : vector<2x128xi1>, vector<2x128xf32>
    %440 = arith.select %423, %432, %439 : vector<2x128xi1>, vector<2x128xf32>
    %441 = vector.extract_strided_slice %4 {offsets = [0, 6, 0], sizes = [1, 2, 128], strides = [1, 1, 1]} : vector<2x16x128xf32> to vector<1x2x128xf32>
    %442 = vector.shape_cast %441 : vector<1x2x128xf32> to vector<2x128xf32>
    %443 = vector.extract_strided_slice %4 {offsets = [1, 6, 0], sizes = [1, 2, 128], strides = [1, 1, 1]} : vector<2x16x128xf32> to vector<1x2x128xf32>
    %444 = vector.shape_cast %443 : vector<1x2x128xf32> to vector<2x128xf32>
    %445 = vector.broadcast %0 : f32 to vector<2x128xf32>
    %446 = arith.mulf %445, %430 : vector<2x128xf32>
    %447 = vector.broadcast %1 : f32 to vector<2x128xf32>
    %448 = arith.mulf %447, %440 : vector<2x128xf32>
    %449 = arith.subf %446, %448 : vector<2x128xf32>
    %450 = arith.addf %449, %442 : vector<2x128xf32>
    %451 = vector.broadcast %0 : f32 to vector<2x128xf32>
    %452 = arith.mulf %451, %440 : vector<2x128xf32>
    %453 = vector.broadcast %1 : f32 to vector<2x128xf32>
    %454 = arith.mulf %453, %430 : vector<2x128xf32>
    %455 = arith.addf %452, %454 : vector<2x128xf32>
    %456 = arith.addf %455, %444 : vector<2x128xf32>
    %457 = vector.broadcast %0 : f32 to vector<2x128xf32>
    %458 = arith.mulf %450, %457 : vector<2x128xf32>
    %459 = vector.broadcast %1 : f32 to vector<2x128xf32>
    %460 = arith.mulf %456, %459 : vector<2x128xf32>
    %461 = arith.addf %458, %460 : vector<2x128xf32>
    %462 = vector.broadcast %2 : f32 to vector<2x128xf32>
    %463 = arith.mulf %461, %462 : vector<2x128xf32>
    %464 = vector.broadcast %0 : f32 to vector<2x128xf32>
    %465 = arith.mulf %456, %464 : vector<2x128xf32>
    %466 = vector.broadcast %1 : f32 to vector<2x128xf32>
    %467 = arith.mulf %450, %466 : vector<2x128xf32>
    %468 = arith.subf %465, %467 : vector<2x128xf32>
    %469 = vector.broadcast %2 : f32 to vector<2x128xf32>
    %470 = arith.mulf %468, %469 : vector<2x128xf32>
    %cst_133 = arith.constant 5.000000e-01 : f32
    %471 = vector.broadcast %cst_133 : f32 to vector<2x128xf32>
    %472 = arith.addf %463, %471 : vector<2x128xf32>
    %473 = math.floor %472 : vector<2x128xf32>
    %cst_134 = arith.constant -1.000000e+00 : f32
    %cst_135 = arith.constant 1.000000e+00 : f32
    %474 = vector.broadcast %cst_134 : f32 to vector<2x128xf32>
    %475 = arith.maximumf %474, %473 : vector<2x128xf32>
    %476 = vector.broadcast %cst_135 : f32 to vector<2x128xf32>
    %477 = arith.minimumf %476, %475 : vector<2x128xf32>
    %cst_136 = arith.constant 5.000000e-01 : f32
    %478 = vector.broadcast %cst_136 : f32 to vector<2x128xf32>
    %479 = arith.addf %470, %478 : vector<2x128xf32>
    %480 = math.floor %479 : vector<2x128xf32>
    %cst_137 = arith.constant -1.000000e+00 : f32
    %cst_138 = arith.constant 1.000000e+00 : f32
    %481 = vector.broadcast %cst_137 : f32 to vector<2x128xf32>
    %482 = arith.maximumf %481, %480 : vector<2x128xf32>
    %483 = vector.broadcast %cst_138 : f32 to vector<2x128xf32>
    %484 = arith.minimumf %483, %482 : vector<2x128xf32>
    %cst_139 = arith.constant 0.000000e+00 : f32
    %485 = vector.broadcast %cst_139 : f32 to vector<2x128xf32>
    %486 = arith.cmpf oeq, %477, %485 : vector<2x128xf32>
    %cst_140 = arith.constant 0.000000e+00 : f32
    %487 = vector.broadcast %cst_140 : f32 to vector<2x128xf32>
    %488 = arith.cmpf oeq, %484, %487 : vector<2x128xf32>
    %489 = arith.andi %486, %488 : vector<2x128xi1>
    %490 = math.absf %463 : vector<2x128xf32>
    %491 = math.absf %470 : vector<2x128xf32>
    %492 = arith.cmpf oge, %490, %491 : vector<2x128xf32>
    %493 = arith.andi %489, %492 : vector<2x128xi1>
    %cst_141 = arith.constant 0.000000e+00 : f32
    %494 = vector.broadcast %cst_141 : f32 to vector<2x128xf32>
    %495 = arith.cmpf oge, %463, %494 : vector<2x128xf32>
    %cst_142 = arith.constant 1.000000e+00 : f32
    %cst_143 = arith.constant -1.000000e+00 : f32
    %496 = vector.broadcast %cst_142 : f32 to vector<2x128xf32>
    %497 = vector.broadcast %cst_143 : f32 to vector<2x128xf32>
    %498 = arith.select %495, %496, %497 : vector<2x128xi1>, vector<2x128xf32>
    %499 = arith.select %493, %498, %477 : vector<2x128xi1>, vector<2x128xf32>
    %cst_144 = arith.constant dense<true> : vector<2x128xi1>
    %500 = arith.xori %492, %cst_144 : vector<2x128xi1>
    %501 = arith.andi %489, %500 : vector<2x128xi1>
    %cst_145 = arith.constant 0.000000e+00 : f32
    %502 = vector.broadcast %cst_145 : f32 to vector<2x128xf32>
    %503 = arith.cmpf oge, %470, %502 : vector<2x128xf32>
    %cst_146 = arith.constant 1.000000e+00 : f32
    %cst_147 = arith.constant -1.000000e+00 : f32
    %504 = vector.broadcast %cst_146 : f32 to vector<2x128xf32>
    %505 = vector.broadcast %cst_147 : f32 to vector<2x128xf32>
    %506 = arith.select %503, %504, %505 : vector<2x128xi1>, vector<2x128xf32>
    %507 = arith.select %501, %506, %484 : vector<2x128xi1>, vector<2x128xf32>
    %cst_148 = arith.constant 2.500000e+00 : f32
    %508 = vector.broadcast %cst_148 : f32 to vector<2x128xf32>
    %509 = arith.mulf %508, %499 : vector<2x128xf32>
    %cst_149 = arith.constant 3.500000e+00 : f32
    %510 = vector.broadcast %cst_149 : f32 to vector<2x128xf32>
    %511 = arith.addf %510, %509 : vector<2x128xf32>
    %cst_150 = arith.constant 5.000000e-01 : f32
    %512 = vector.broadcast %cst_150 : f32 to vector<2x128xf32>
    %513 = arith.mulf %512, %499 : vector<2x128xf32>
    %514 = arith.mulf %513, %499 : vector<2x128xf32>
    %cst_151 = arith.constant 5.000000e-01 : f32
    %515 = vector.broadcast %cst_151 : f32 to vector<2x128xf32>
    %516 = arith.addf %515, %514 : vector<2x128xf32>
    %517 = arith.mulf %507, %516 : vector<2x128xf32>
    %518 = arith.addf %511, %517 : vector<2x128xf32>
    %519 = arith.fptosi %518 : vector<2x128xf32> to vector<2x128xi32>
    %520 = arith.xori %519, %418 : vector<2x128xi32>
    %c1_i32_152 = arith.constant 1 : i32
    %521 = vector.broadcast %c1_i32_152 : i32 to vector<2x128xi32>
    %522 = arith.andi %520, %521 : vector<2x128xi32>
    %523 = arith.addi %411, %522 : vector<2x128xi32>
    %c1_i32_153 = arith.constant 1 : i32
    %524 = vector.broadcast %c1_i32_153 : i32 to vector<2x128xi32>
    %525 = arith.shrsi %520, %524 : vector<2x128xi32>
    %c1_i32_154 = arith.constant 1 : i32
    %526 = vector.broadcast %c1_i32_154 : i32 to vector<2x128xi32>
    %527 = arith.andi %525, %526 : vector<2x128xi32>
    %528 = arith.addi %523, %527 : vector<2x128xi32>
    %c2_i32_155 = arith.constant 2 : i32
    %529 = vector.broadcast %c2_i32_155 : i32 to vector<2x128xi32>
    %530 = arith.shrsi %520, %529 : vector<2x128xi32>
    %c1_i32_156 = arith.constant 1 : i32
    %531 = vector.broadcast %c1_i32_156 : i32 to vector<2x128xi32>
    %532 = arith.andi %530, %531 : vector<2x128xi32>
    %533 = arith.addi %528, %532 : vector<2x128xi32>
    %c12_i32_157 = arith.constant 12 : i32
    %534 = vector.broadcast %c12_i32_157 : i32 to vector<2x128xi32>
    %535 = arith.shli %519, %534 : vector<2x128xi32>
    %536 = arith.addi %414, %535 : vector<2x128xi32>
    %c9_i32 = arith.constant 9 : i32
    %537 = vector.broadcast %c9_i32 : i32 to vector<2x128xi32>
    %538 = arith.shrsi %46, %537 : vector<2x128xi32>
    %c7_i32_158 = arith.constant 7 : i32
    %539 = vector.broadcast %c7_i32_158 : i32 to vector<2x128xi32>
    %540 = arith.andi %538, %539 : vector<2x128xi32>
    %541 = arith.sitofp %540 : vector<2x128xi32> to vector<2x128xf32>
    %c5_i32_159 = arith.constant 5 : i32
    %542 = vector.broadcast %c5_i32_159 : i32 to vector<2x128xi32>
    %543 = arith.cmpi sge, %540, %542 : vector<2x128xi32>
    %c2_i32_160 = arith.constant 2 : i32
    %544 = vector.broadcast %c2_i32_160 : i32 to vector<2x128xi32>
    %545 = arith.cmpi sle, %540, %544 : vector<2x128xi32>
    %cst_161 = arith.constant 1.000000e+00 : f32
    %cst_162 = arith.constant 0.000000e+00 : f32
    %546 = vector.broadcast %cst_161 : f32 to vector<2x128xf32>
    %547 = vector.broadcast %cst_162 : f32 to vector<2x128xf32>
    %548 = arith.select %543, %546, %547 : vector<2x128xi1>, vector<2x128xf32>
    %cst_163 = arith.constant 1.000000e+00 : f32
    %cst_164 = arith.constant 0.000000e+00 : f32
    %549 = vector.broadcast %cst_163 : f32 to vector<2x128xf32>
    %550 = vector.broadcast %cst_164 : f32 to vector<2x128xf32>
    %551 = arith.select %545, %549, %550 : vector<2x128xi1>, vector<2x128xf32>
    %552 = arith.subf %548, %551 : vector<2x128xf32>
    %cst_165 = arith.constant 1.000000e+00 : f32
    %553 = vector.broadcast %cst_165 : f32 to vector<2x128xf32>
    %554 = arith.subf %541, %553 : vector<2x128xf32>
    %cst_166 = arith.constant 6.000000e+00 : f32
    %555 = vector.broadcast %cst_166 : f32 to vector<2x128xf32>
    %556 = arith.subf %541, %555 : vector<2x128xf32>
    %cst_167 = arith.constant 2.000000e+00 : f32
    %557 = vector.broadcast %cst_167 : f32 to vector<2x128xf32>
    %558 = arith.mulf %557, %541 : vector<2x128xf32>
    %cst_168 = arith.constant 7.000000e+00 : f32
    %559 = vector.broadcast %cst_168 : f32 to vector<2x128xf32>
    %560 = arith.subf %558, %559 : vector<2x128xf32>
    %561 = arith.select %543, %556, %560 : vector<2x128xi1>, vector<2x128xf32>
    %562 = arith.select %545, %554, %561 : vector<2x128xi1>, vector<2x128xf32>
    %563 = vector.extract_strided_slice %4 {offsets = [0, 8, 0], sizes = [1, 2, 128], strides = [1, 1, 1]} : vector<2x16x128xf32> to vector<1x2x128xf32>
    %564 = vector.shape_cast %563 : vector<1x2x128xf32> to vector<2x128xf32>
    %565 = vector.extract_strided_slice %4 {offsets = [1, 8, 0], sizes = [1, 2, 128], strides = [1, 1, 1]} : vector<2x16x128xf32> to vector<1x2x128xf32>
    %566 = vector.shape_cast %565 : vector<1x2x128xf32> to vector<2x128xf32>
    %567 = vector.broadcast %0 : f32 to vector<2x128xf32>
    %568 = arith.mulf %567, %552 : vector<2x128xf32>
    %569 = vector.broadcast %1 : f32 to vector<2x128xf32>
    %570 = arith.mulf %569, %562 : vector<2x128xf32>
    %571 = arith.subf %568, %570 : vector<2x128xf32>
    %572 = arith.addf %571, %564 : vector<2x128xf32>
    %573 = vector.broadcast %0 : f32 to vector<2x128xf32>
    %574 = arith.mulf %573, %562 : vector<2x128xf32>
    %575 = vector.broadcast %1 : f32 to vector<2x128xf32>
    %576 = arith.mulf %575, %552 : vector<2x128xf32>
    %577 = arith.addf %574, %576 : vector<2x128xf32>
    %578 = arith.addf %577, %566 : vector<2x128xf32>
    %579 = vector.broadcast %0 : f32 to vector<2x128xf32>
    %580 = arith.mulf %572, %579 : vector<2x128xf32>
    %581 = vector.broadcast %1 : f32 to vector<2x128xf32>
    %582 = arith.mulf %578, %581 : vector<2x128xf32>
    %583 = arith.addf %580, %582 : vector<2x128xf32>
    %584 = vector.broadcast %2 : f32 to vector<2x128xf32>
    %585 = arith.mulf %583, %584 : vector<2x128xf32>
    %586 = vector.broadcast %0 : f32 to vector<2x128xf32>
    %587 = arith.mulf %578, %586 : vector<2x128xf32>
    %588 = vector.broadcast %1 : f32 to vector<2x128xf32>
    %589 = arith.mulf %572, %588 : vector<2x128xf32>
    %590 = arith.subf %587, %589 : vector<2x128xf32>
    %591 = vector.broadcast %2 : f32 to vector<2x128xf32>
    %592 = arith.mulf %590, %591 : vector<2x128xf32>
    %cst_169 = arith.constant 5.000000e-01 : f32
    %593 = vector.broadcast %cst_169 : f32 to vector<2x128xf32>
    %594 = arith.addf %585, %593 : vector<2x128xf32>
    %595 = math.floor %594 : vector<2x128xf32>
    %cst_170 = arith.constant -1.000000e+00 : f32
    %cst_171 = arith.constant 1.000000e+00 : f32
    %596 = vector.broadcast %cst_170 : f32 to vector<2x128xf32>
    %597 = arith.maximumf %596, %595 : vector<2x128xf32>
    %598 = vector.broadcast %cst_171 : f32 to vector<2x128xf32>
    %599 = arith.minimumf %598, %597 : vector<2x128xf32>
    %cst_172 = arith.constant 5.000000e-01 : f32
    %600 = vector.broadcast %cst_172 : f32 to vector<2x128xf32>
    %601 = arith.addf %592, %600 : vector<2x128xf32>
    %602 = math.floor %601 : vector<2x128xf32>
    %cst_173 = arith.constant -1.000000e+00 : f32
    %cst_174 = arith.constant 1.000000e+00 : f32
    %603 = vector.broadcast %cst_173 : f32 to vector<2x128xf32>
    %604 = arith.maximumf %603, %602 : vector<2x128xf32>
    %605 = vector.broadcast %cst_174 : f32 to vector<2x128xf32>
    %606 = arith.minimumf %605, %604 : vector<2x128xf32>
    %cst_175 = arith.constant 0.000000e+00 : f32
    %607 = vector.broadcast %cst_175 : f32 to vector<2x128xf32>
    %608 = arith.cmpf oeq, %599, %607 : vector<2x128xf32>
    %cst_176 = arith.constant 0.000000e+00 : f32
    %609 = vector.broadcast %cst_176 : f32 to vector<2x128xf32>
    %610 = arith.cmpf oeq, %606, %609 : vector<2x128xf32>
    %611 = arith.andi %608, %610 : vector<2x128xi1>
    %612 = math.absf %585 : vector<2x128xf32>
    %613 = math.absf %592 : vector<2x128xf32>
    %614 = arith.cmpf oge, %612, %613 : vector<2x128xf32>
    %615 = arith.andi %611, %614 : vector<2x128xi1>
    %cst_177 = arith.constant 0.000000e+00 : f32
    %616 = vector.broadcast %cst_177 : f32 to vector<2x128xf32>
    %617 = arith.cmpf oge, %585, %616 : vector<2x128xf32>
    %cst_178 = arith.constant 1.000000e+00 : f32
    %cst_179 = arith.constant -1.000000e+00 : f32
    %618 = vector.broadcast %cst_178 : f32 to vector<2x128xf32>
    %619 = vector.broadcast %cst_179 : f32 to vector<2x128xf32>
    %620 = arith.select %617, %618, %619 : vector<2x128xi1>, vector<2x128xf32>
    %621 = arith.select %615, %620, %599 : vector<2x128xi1>, vector<2x128xf32>
    %cst_180 = arith.constant dense<true> : vector<2x128xi1>
    %622 = arith.xori %614, %cst_180 : vector<2x128xi1>
    %623 = arith.andi %611, %622 : vector<2x128xi1>
    %cst_181 = arith.constant 0.000000e+00 : f32
    %624 = vector.broadcast %cst_181 : f32 to vector<2x128xf32>
    %625 = arith.cmpf oge, %592, %624 : vector<2x128xf32>
    %cst_182 = arith.constant 1.000000e+00 : f32
    %cst_183 = arith.constant -1.000000e+00 : f32
    %626 = vector.broadcast %cst_182 : f32 to vector<2x128xf32>
    %627 = vector.broadcast %cst_183 : f32 to vector<2x128xf32>
    %628 = arith.select %625, %626, %627 : vector<2x128xi1>, vector<2x128xf32>
    %629 = arith.select %623, %628, %606 : vector<2x128xi1>, vector<2x128xf32>
    %cst_184 = arith.constant 2.500000e+00 : f32
    %630 = vector.broadcast %cst_184 : f32 to vector<2x128xf32>
    %631 = arith.mulf %630, %621 : vector<2x128xf32>
    %cst_185 = arith.constant 3.500000e+00 : f32
    %632 = vector.broadcast %cst_185 : f32 to vector<2x128xf32>
    %633 = arith.addf %632, %631 : vector<2x128xf32>
    %cst_186 = arith.constant 5.000000e-01 : f32
    %634 = vector.broadcast %cst_186 : f32 to vector<2x128xf32>
    %635 = arith.mulf %634, %621 : vector<2x128xf32>
    %636 = arith.mulf %635, %621 : vector<2x128xf32>
    %cst_187 = arith.constant 5.000000e-01 : f32
    %637 = vector.broadcast %cst_187 : f32 to vector<2x128xf32>
    %638 = arith.addf %637, %636 : vector<2x128xf32>
    %639 = arith.mulf %629, %638 : vector<2x128xf32>
    %640 = arith.addf %633, %639 : vector<2x128xf32>
    %641 = arith.fptosi %640 : vector<2x128xf32> to vector<2x128xi32>
    %642 = arith.xori %641, %540 : vector<2x128xi32>
    %c1_i32_188 = arith.constant 1 : i32
    %643 = vector.broadcast %c1_i32_188 : i32 to vector<2x128xi32>
    %644 = arith.andi %642, %643 : vector<2x128xi32>
    %645 = arith.addi %533, %644 : vector<2x128xi32>
    %c1_i32_189 = arith.constant 1 : i32
    %646 = vector.broadcast %c1_i32_189 : i32 to vector<2x128xi32>
    %647 = arith.shrsi %642, %646 : vector<2x128xi32>
    %c1_i32_190 = arith.constant 1 : i32
    %648 = vector.broadcast %c1_i32_190 : i32 to vector<2x128xi32>
    %649 = arith.andi %647, %648 : vector<2x128xi32>
    %650 = arith.addi %645, %649 : vector<2x128xi32>
    %c2_i32_191 = arith.constant 2 : i32
    %651 = vector.broadcast %c2_i32_191 : i32 to vector<2x128xi32>
    %652 = arith.shrsi %642, %651 : vector<2x128xi32>
    %c1_i32_192 = arith.constant 1 : i32
    %653 = vector.broadcast %c1_i32_192 : i32 to vector<2x128xi32>
    %654 = arith.andi %652, %653 : vector<2x128xi32>
    %655 = arith.addi %650, %654 : vector<2x128xi32>
    %c9_i32_193 = arith.constant 9 : i32
    %656 = vector.broadcast %c9_i32_193 : i32 to vector<2x128xi32>
    %657 = arith.shli %641, %656 : vector<2x128xi32>
    %658 = arith.addi %536, %657 : vector<2x128xi32>
    %c6_i32 = arith.constant 6 : i32
    %659 = vector.broadcast %c6_i32 : i32 to vector<2x128xi32>
    %660 = arith.shrsi %46, %659 : vector<2x128xi32>
    %c7_i32_194 = arith.constant 7 : i32
    %661 = vector.broadcast %c7_i32_194 : i32 to vector<2x128xi32>
    %662 = arith.andi %660, %661 : vector<2x128xi32>
    %663 = arith.sitofp %662 : vector<2x128xi32> to vector<2x128xf32>
    %c5_i32_195 = arith.constant 5 : i32
    %664 = vector.broadcast %c5_i32_195 : i32 to vector<2x128xi32>
    %665 = arith.cmpi sge, %662, %664 : vector<2x128xi32>
    %c2_i32_196 = arith.constant 2 : i32
    %666 = vector.broadcast %c2_i32_196 : i32 to vector<2x128xi32>
    %667 = arith.cmpi sle, %662, %666 : vector<2x128xi32>
    %cst_197 = arith.constant 1.000000e+00 : f32
    %cst_198 = arith.constant 0.000000e+00 : f32
    %668 = vector.broadcast %cst_197 : f32 to vector<2x128xf32>
    %669 = vector.broadcast %cst_198 : f32 to vector<2x128xf32>
    %670 = arith.select %665, %668, %669 : vector<2x128xi1>, vector<2x128xf32>
    %cst_199 = arith.constant 1.000000e+00 : f32
    %cst_200 = arith.constant 0.000000e+00 : f32
    %671 = vector.broadcast %cst_199 : f32 to vector<2x128xf32>
    %672 = vector.broadcast %cst_200 : f32 to vector<2x128xf32>
    %673 = arith.select %667, %671, %672 : vector<2x128xi1>, vector<2x128xf32>
    %674 = arith.subf %670, %673 : vector<2x128xf32>
    %cst_201 = arith.constant 1.000000e+00 : f32
    %675 = vector.broadcast %cst_201 : f32 to vector<2x128xf32>
    %676 = arith.subf %663, %675 : vector<2x128xf32>
    %cst_202 = arith.constant 6.000000e+00 : f32
    %677 = vector.broadcast %cst_202 : f32 to vector<2x128xf32>
    %678 = arith.subf %663, %677 : vector<2x128xf32>
    %cst_203 = arith.constant 2.000000e+00 : f32
    %679 = vector.broadcast %cst_203 : f32 to vector<2x128xf32>
    %680 = arith.mulf %679, %663 : vector<2x128xf32>
    %cst_204 = arith.constant 7.000000e+00 : f32
    %681 = vector.broadcast %cst_204 : f32 to vector<2x128xf32>
    %682 = arith.subf %680, %681 : vector<2x128xf32>
    %683 = arith.select %665, %678, %682 : vector<2x128xi1>, vector<2x128xf32>
    %684 = arith.select %667, %676, %683 : vector<2x128xi1>, vector<2x128xf32>
    %685 = vector.extract_strided_slice %4 {offsets = [0, 10, 0], sizes = [1, 2, 128], strides = [1, 1, 1]} : vector<2x16x128xf32> to vector<1x2x128xf32>
    %686 = vector.shape_cast %685 : vector<1x2x128xf32> to vector<2x128xf32>
    %687 = vector.extract_strided_slice %4 {offsets = [1, 10, 0], sizes = [1, 2, 128], strides = [1, 1, 1]} : vector<2x16x128xf32> to vector<1x2x128xf32>
    %688 = vector.shape_cast %687 : vector<1x2x128xf32> to vector<2x128xf32>
    %689 = vector.broadcast %0 : f32 to vector<2x128xf32>
    %690 = arith.mulf %689, %674 : vector<2x128xf32>
    %691 = vector.broadcast %1 : f32 to vector<2x128xf32>
    %692 = arith.mulf %691, %684 : vector<2x128xf32>
    %693 = arith.subf %690, %692 : vector<2x128xf32>
    %694 = arith.addf %693, %686 : vector<2x128xf32>
    %695 = vector.broadcast %0 : f32 to vector<2x128xf32>
    %696 = arith.mulf %695, %684 : vector<2x128xf32>
    %697 = vector.broadcast %1 : f32 to vector<2x128xf32>
    %698 = arith.mulf %697, %674 : vector<2x128xf32>
    %699 = arith.addf %696, %698 : vector<2x128xf32>
    %700 = arith.addf %699, %688 : vector<2x128xf32>
    %701 = vector.broadcast %0 : f32 to vector<2x128xf32>
    %702 = arith.mulf %694, %701 : vector<2x128xf32>
    %703 = vector.broadcast %1 : f32 to vector<2x128xf32>
    %704 = arith.mulf %700, %703 : vector<2x128xf32>
    %705 = arith.addf %702, %704 : vector<2x128xf32>
    %706 = vector.broadcast %2 : f32 to vector<2x128xf32>
    %707 = arith.mulf %705, %706 : vector<2x128xf32>
    %708 = vector.broadcast %0 : f32 to vector<2x128xf32>
    %709 = arith.mulf %700, %708 : vector<2x128xf32>
    %710 = vector.broadcast %1 : f32 to vector<2x128xf32>
    %711 = arith.mulf %694, %710 : vector<2x128xf32>
    %712 = arith.subf %709, %711 : vector<2x128xf32>
    %713 = vector.broadcast %2 : f32 to vector<2x128xf32>
    %714 = arith.mulf %712, %713 : vector<2x128xf32>
    %cst_205 = arith.constant 5.000000e-01 : f32
    %715 = vector.broadcast %cst_205 : f32 to vector<2x128xf32>
    %716 = arith.addf %707, %715 : vector<2x128xf32>
    %717 = math.floor %716 : vector<2x128xf32>
    %cst_206 = arith.constant -1.000000e+00 : f32
    %cst_207 = arith.constant 1.000000e+00 : f32
    %718 = vector.broadcast %cst_206 : f32 to vector<2x128xf32>
    %719 = arith.maximumf %718, %717 : vector<2x128xf32>
    %720 = vector.broadcast %cst_207 : f32 to vector<2x128xf32>
    %721 = arith.minimumf %720, %719 : vector<2x128xf32>
    %cst_208 = arith.constant 5.000000e-01 : f32
    %722 = vector.broadcast %cst_208 : f32 to vector<2x128xf32>
    %723 = arith.addf %714, %722 : vector<2x128xf32>
    %724 = math.floor %723 : vector<2x128xf32>
    %cst_209 = arith.constant -1.000000e+00 : f32
    %cst_210 = arith.constant 1.000000e+00 : f32
    %725 = vector.broadcast %cst_209 : f32 to vector<2x128xf32>
    %726 = arith.maximumf %725, %724 : vector<2x128xf32>
    %727 = vector.broadcast %cst_210 : f32 to vector<2x128xf32>
    %728 = arith.minimumf %727, %726 : vector<2x128xf32>
    %cst_211 = arith.constant 0.000000e+00 : f32
    %729 = vector.broadcast %cst_211 : f32 to vector<2x128xf32>
    %730 = arith.cmpf oeq, %721, %729 : vector<2x128xf32>
    %cst_212 = arith.constant 0.000000e+00 : f32
    %731 = vector.broadcast %cst_212 : f32 to vector<2x128xf32>
    %732 = arith.cmpf oeq, %728, %731 : vector<2x128xf32>
    %733 = arith.andi %730, %732 : vector<2x128xi1>
    %734 = math.absf %707 : vector<2x128xf32>
    %735 = math.absf %714 : vector<2x128xf32>
    %736 = arith.cmpf oge, %734, %735 : vector<2x128xf32>
    %737 = arith.andi %733, %736 : vector<2x128xi1>
    %cst_213 = arith.constant 0.000000e+00 : f32
    %738 = vector.broadcast %cst_213 : f32 to vector<2x128xf32>
    %739 = arith.cmpf oge, %707, %738 : vector<2x128xf32>
    %cst_214 = arith.constant 1.000000e+00 : f32
    %cst_215 = arith.constant -1.000000e+00 : f32
    %740 = vector.broadcast %cst_214 : f32 to vector<2x128xf32>
    %741 = vector.broadcast %cst_215 : f32 to vector<2x128xf32>
    %742 = arith.select %739, %740, %741 : vector<2x128xi1>, vector<2x128xf32>
    %743 = arith.select %737, %742, %721 : vector<2x128xi1>, vector<2x128xf32>
    %cst_216 = arith.constant dense<true> : vector<2x128xi1>
    %744 = arith.xori %736, %cst_216 : vector<2x128xi1>
    %745 = arith.andi %733, %744 : vector<2x128xi1>
    %cst_217 = arith.constant 0.000000e+00 : f32
    %746 = vector.broadcast %cst_217 : f32 to vector<2x128xf32>
    %747 = arith.cmpf oge, %714, %746 : vector<2x128xf32>
    %cst_218 = arith.constant 1.000000e+00 : f32
    %cst_219 = arith.constant -1.000000e+00 : f32
    %748 = vector.broadcast %cst_218 : f32 to vector<2x128xf32>
    %749 = vector.broadcast %cst_219 : f32 to vector<2x128xf32>
    %750 = arith.select %747, %748, %749 : vector<2x128xi1>, vector<2x128xf32>
    %751 = arith.select %745, %750, %728 : vector<2x128xi1>, vector<2x128xf32>
    %cst_220 = arith.constant 2.500000e+00 : f32
    %752 = vector.broadcast %cst_220 : f32 to vector<2x128xf32>
    %753 = arith.mulf %752, %743 : vector<2x128xf32>
    %cst_221 = arith.constant 3.500000e+00 : f32
    %754 = vector.broadcast %cst_221 : f32 to vector<2x128xf32>
    %755 = arith.addf %754, %753 : vector<2x128xf32>
    %cst_222 = arith.constant 5.000000e-01 : f32
    %756 = vector.broadcast %cst_222 : f32 to vector<2x128xf32>
    %757 = arith.mulf %756, %743 : vector<2x128xf32>
    %758 = arith.mulf %757, %743 : vector<2x128xf32>
    %cst_223 = arith.constant 5.000000e-01 : f32
    %759 = vector.broadcast %cst_223 : f32 to vector<2x128xf32>
    %760 = arith.addf %759, %758 : vector<2x128xf32>
    %761 = arith.mulf %751, %760 : vector<2x128xf32>
    %762 = arith.addf %755, %761 : vector<2x128xf32>
    %763 = arith.fptosi %762 : vector<2x128xf32> to vector<2x128xi32>
    %764 = arith.xori %763, %662 : vector<2x128xi32>
    %c1_i32_224 = arith.constant 1 : i32
    %765 = vector.broadcast %c1_i32_224 : i32 to vector<2x128xi32>
    %766 = arith.andi %764, %765 : vector<2x128xi32>
    %767 = arith.addi %655, %766 : vector<2x128xi32>
    %c1_i32_225 = arith.constant 1 : i32
    %768 = vector.broadcast %c1_i32_225 : i32 to vector<2x128xi32>
    %769 = arith.shrsi %764, %768 : vector<2x128xi32>
    %c1_i32_226 = arith.constant 1 : i32
    %770 = vector.broadcast %c1_i32_226 : i32 to vector<2x128xi32>
    %771 = arith.andi %769, %770 : vector<2x128xi32>
    %772 = arith.addi %767, %771 : vector<2x128xi32>
    %c2_i32_227 = arith.constant 2 : i32
    %773 = vector.broadcast %c2_i32_227 : i32 to vector<2x128xi32>
    %774 = arith.shrsi %764, %773 : vector<2x128xi32>
    %c1_i32_228 = arith.constant 1 : i32
    %775 = vector.broadcast %c1_i32_228 : i32 to vector<2x128xi32>
    %776 = arith.andi %774, %775 : vector<2x128xi32>
    %777 = arith.addi %772, %776 : vector<2x128xi32>
    %c6_i32_229 = arith.constant 6 : i32
    %778 = vector.broadcast %c6_i32_229 : i32 to vector<2x128xi32>
    %779 = arith.shli %763, %778 : vector<2x128xi32>
    %780 = arith.addi %658, %779 : vector<2x128xi32>
    %c3_i32 = arith.constant 3 : i32
    %781 = vector.broadcast %c3_i32 : i32 to vector<2x128xi32>
    %782 = arith.shrsi %46, %781 : vector<2x128xi32>
    %c7_i32_230 = arith.constant 7 : i32
    %783 = vector.broadcast %c7_i32_230 : i32 to vector<2x128xi32>
    %784 = arith.andi %782, %783 : vector<2x128xi32>
    %785 = arith.sitofp %784 : vector<2x128xi32> to vector<2x128xf32>
    %c5_i32_231 = arith.constant 5 : i32
    %786 = vector.broadcast %c5_i32_231 : i32 to vector<2x128xi32>
    %787 = arith.cmpi sge, %784, %786 : vector<2x128xi32>
    %c2_i32_232 = arith.constant 2 : i32
    %788 = vector.broadcast %c2_i32_232 : i32 to vector<2x128xi32>
    %789 = arith.cmpi sle, %784, %788 : vector<2x128xi32>
    %cst_233 = arith.constant 1.000000e+00 : f32
    %cst_234 = arith.constant 0.000000e+00 : f32
    %790 = vector.broadcast %cst_233 : f32 to vector<2x128xf32>
    %791 = vector.broadcast %cst_234 : f32 to vector<2x128xf32>
    %792 = arith.select %787, %790, %791 : vector<2x128xi1>, vector<2x128xf32>
    %cst_235 = arith.constant 1.000000e+00 : f32
    %cst_236 = arith.constant 0.000000e+00 : f32
    %793 = vector.broadcast %cst_235 : f32 to vector<2x128xf32>
    %794 = vector.broadcast %cst_236 : f32 to vector<2x128xf32>
    %795 = arith.select %789, %793, %794 : vector<2x128xi1>, vector<2x128xf32>
    %796 = arith.subf %792, %795 : vector<2x128xf32>
    %cst_237 = arith.constant 1.000000e+00 : f32
    %797 = vector.broadcast %cst_237 : f32 to vector<2x128xf32>
    %798 = arith.subf %785, %797 : vector<2x128xf32>
    %cst_238 = arith.constant 6.000000e+00 : f32
    %799 = vector.broadcast %cst_238 : f32 to vector<2x128xf32>
    %800 = arith.subf %785, %799 : vector<2x128xf32>
    %cst_239 = arith.constant 2.000000e+00 : f32
    %801 = vector.broadcast %cst_239 : f32 to vector<2x128xf32>
    %802 = arith.mulf %801, %785 : vector<2x128xf32>
    %cst_240 = arith.constant 7.000000e+00 : f32
    %803 = vector.broadcast %cst_240 : f32 to vector<2x128xf32>
    %804 = arith.subf %802, %803 : vector<2x128xf32>
    %805 = arith.select %787, %800, %804 : vector<2x128xi1>, vector<2x128xf32>
    %806 = arith.select %789, %798, %805 : vector<2x128xi1>, vector<2x128xf32>
    %807 = vector.extract_strided_slice %4 {offsets = [0, 12, 0], sizes = [1, 2, 128], strides = [1, 1, 1]} : vector<2x16x128xf32> to vector<1x2x128xf32>
    %808 = vector.shape_cast %807 : vector<1x2x128xf32> to vector<2x128xf32>
    %809 = vector.extract_strided_slice %4 {offsets = [1, 12, 0], sizes = [1, 2, 128], strides = [1, 1, 1]} : vector<2x16x128xf32> to vector<1x2x128xf32>
    %810 = vector.shape_cast %809 : vector<1x2x128xf32> to vector<2x128xf32>
    %811 = vector.broadcast %0 : f32 to vector<2x128xf32>
    %812 = arith.mulf %811, %796 : vector<2x128xf32>
    %813 = vector.broadcast %1 : f32 to vector<2x128xf32>
    %814 = arith.mulf %813, %806 : vector<2x128xf32>
    %815 = arith.subf %812, %814 : vector<2x128xf32>
    %816 = arith.addf %815, %808 : vector<2x128xf32>
    %817 = vector.broadcast %0 : f32 to vector<2x128xf32>
    %818 = arith.mulf %817, %806 : vector<2x128xf32>
    %819 = vector.broadcast %1 : f32 to vector<2x128xf32>
    %820 = arith.mulf %819, %796 : vector<2x128xf32>
    %821 = arith.addf %818, %820 : vector<2x128xf32>
    %822 = arith.addf %821, %810 : vector<2x128xf32>
    %823 = vector.broadcast %0 : f32 to vector<2x128xf32>
    %824 = arith.mulf %816, %823 : vector<2x128xf32>
    %825 = vector.broadcast %1 : f32 to vector<2x128xf32>
    %826 = arith.mulf %822, %825 : vector<2x128xf32>
    %827 = arith.addf %824, %826 : vector<2x128xf32>
    %828 = vector.broadcast %2 : f32 to vector<2x128xf32>
    %829 = arith.mulf %827, %828 : vector<2x128xf32>
    %830 = vector.broadcast %0 : f32 to vector<2x128xf32>
    %831 = arith.mulf %822, %830 : vector<2x128xf32>
    %832 = vector.broadcast %1 : f32 to vector<2x128xf32>
    %833 = arith.mulf %816, %832 : vector<2x128xf32>
    %834 = arith.subf %831, %833 : vector<2x128xf32>
    %835 = vector.broadcast %2 : f32 to vector<2x128xf32>
    %836 = arith.mulf %834, %835 : vector<2x128xf32>
    %cst_241 = arith.constant 5.000000e-01 : f32
    %837 = vector.broadcast %cst_241 : f32 to vector<2x128xf32>
    %838 = arith.addf %829, %837 : vector<2x128xf32>
    %839 = math.floor %838 : vector<2x128xf32>
    %cst_242 = arith.constant -1.000000e+00 : f32
    %cst_243 = arith.constant 1.000000e+00 : f32
    %840 = vector.broadcast %cst_242 : f32 to vector<2x128xf32>
    %841 = arith.maximumf %840, %839 : vector<2x128xf32>
    %842 = vector.broadcast %cst_243 : f32 to vector<2x128xf32>
    %843 = arith.minimumf %842, %841 : vector<2x128xf32>
    %cst_244 = arith.constant 5.000000e-01 : f32
    %844 = vector.broadcast %cst_244 : f32 to vector<2x128xf32>
    %845 = arith.addf %836, %844 : vector<2x128xf32>
    %846 = math.floor %845 : vector<2x128xf32>
    %cst_245 = arith.constant -1.000000e+00 : f32
    %cst_246 = arith.constant 1.000000e+00 : f32
    %847 = vector.broadcast %cst_245 : f32 to vector<2x128xf32>
    %848 = arith.maximumf %847, %846 : vector<2x128xf32>
    %849 = vector.broadcast %cst_246 : f32 to vector<2x128xf32>
    %850 = arith.minimumf %849, %848 : vector<2x128xf32>
    %cst_247 = arith.constant 0.000000e+00 : f32
    %851 = vector.broadcast %cst_247 : f32 to vector<2x128xf32>
    %852 = arith.cmpf oeq, %843, %851 : vector<2x128xf32>
    %cst_248 = arith.constant 0.000000e+00 : f32
    %853 = vector.broadcast %cst_248 : f32 to vector<2x128xf32>
    %854 = arith.cmpf oeq, %850, %853 : vector<2x128xf32>
    %855 = arith.andi %852, %854 : vector<2x128xi1>
    %856 = math.absf %829 : vector<2x128xf32>
    %857 = math.absf %836 : vector<2x128xf32>
    %858 = arith.cmpf oge, %856, %857 : vector<2x128xf32>
    %859 = arith.andi %855, %858 : vector<2x128xi1>
    %cst_249 = arith.constant 0.000000e+00 : f32
    %860 = vector.broadcast %cst_249 : f32 to vector<2x128xf32>
    %861 = arith.cmpf oge, %829, %860 : vector<2x128xf32>
    %cst_250 = arith.constant 1.000000e+00 : f32
    %cst_251 = arith.constant -1.000000e+00 : f32
    %862 = vector.broadcast %cst_250 : f32 to vector<2x128xf32>
    %863 = vector.broadcast %cst_251 : f32 to vector<2x128xf32>
    %864 = arith.select %861, %862, %863 : vector<2x128xi1>, vector<2x128xf32>
    %865 = arith.select %859, %864, %843 : vector<2x128xi1>, vector<2x128xf32>
    %cst_252 = arith.constant dense<true> : vector<2x128xi1>
    %866 = arith.xori %858, %cst_252 : vector<2x128xi1>
    %867 = arith.andi %855, %866 : vector<2x128xi1>
    %cst_253 = arith.constant 0.000000e+00 : f32
    %868 = vector.broadcast %cst_253 : f32 to vector<2x128xf32>
    %869 = arith.cmpf oge, %836, %868 : vector<2x128xf32>
    %cst_254 = arith.constant 1.000000e+00 : f32
    %cst_255 = arith.constant -1.000000e+00 : f32
    %870 = vector.broadcast %cst_254 : f32 to vector<2x128xf32>
    %871 = vector.broadcast %cst_255 : f32 to vector<2x128xf32>
    %872 = arith.select %869, %870, %871 : vector<2x128xi1>, vector<2x128xf32>
    %873 = arith.select %867, %872, %850 : vector<2x128xi1>, vector<2x128xf32>
    %cst_256 = arith.constant 2.500000e+00 : f32
    %874 = vector.broadcast %cst_256 : f32 to vector<2x128xf32>
    %875 = arith.mulf %874, %865 : vector<2x128xf32>
    %cst_257 = arith.constant 3.500000e+00 : f32
    %876 = vector.broadcast %cst_257 : f32 to vector<2x128xf32>
    %877 = arith.addf %876, %875 : vector<2x128xf32>
    %cst_258 = arith.constant 5.000000e-01 : f32
    %878 = vector.broadcast %cst_258 : f32 to vector<2x128xf32>
    %879 = arith.mulf %878, %865 : vector<2x128xf32>
    %880 = arith.mulf %879, %865 : vector<2x128xf32>
    %cst_259 = arith.constant 5.000000e-01 : f32
    %881 = vector.broadcast %cst_259 : f32 to vector<2x128xf32>
    %882 = arith.addf %881, %880 : vector<2x128xf32>
    %883 = arith.mulf %873, %882 : vector<2x128xf32>
    %884 = arith.addf %877, %883 : vector<2x128xf32>
    %885 = arith.fptosi %884 : vector<2x128xf32> to vector<2x128xi32>
    %886 = arith.xori %885, %784 : vector<2x128xi32>
    %c1_i32_260 = arith.constant 1 : i32
    %887 = vector.broadcast %c1_i32_260 : i32 to vector<2x128xi32>
    %888 = arith.andi %886, %887 : vector<2x128xi32>
    %889 = arith.addi %777, %888 : vector<2x128xi32>
    %c1_i32_261 = arith.constant 1 : i32
    %890 = vector.broadcast %c1_i32_261 : i32 to vector<2x128xi32>
    %891 = arith.shrsi %886, %890 : vector<2x128xi32>
    %c1_i32_262 = arith.constant 1 : i32
    %892 = vector.broadcast %c1_i32_262 : i32 to vector<2x128xi32>
    %893 = arith.andi %891, %892 : vector<2x128xi32>
    %894 = arith.addi %889, %893 : vector<2x128xi32>
    %c2_i32_263 = arith.constant 2 : i32
    %895 = vector.broadcast %c2_i32_263 : i32 to vector<2x128xi32>
    %896 = arith.shrsi %886, %895 : vector<2x128xi32>
    %c1_i32_264 = arith.constant 1 : i32
    %897 = vector.broadcast %c1_i32_264 : i32 to vector<2x128xi32>
    %898 = arith.andi %896, %897 : vector<2x128xi32>
    %899 = arith.addi %894, %898 : vector<2x128xi32>
    %c3_i32_265 = arith.constant 3 : i32
    %900 = vector.broadcast %c3_i32_265 : i32 to vector<2x128xi32>
    %901 = arith.shli %885, %900 : vector<2x128xi32>
    %902 = arith.addi %780, %901 : vector<2x128xi32>
    %c0_i32_266 = arith.constant 0 : i32
    %903 = vector.broadcast %c0_i32_266 : i32 to vector<2x128xi32>
    %904 = arith.shrsi %46, %903 : vector<2x128xi32>
    %c7_i32_267 = arith.constant 7 : i32
    %905 = vector.broadcast %c7_i32_267 : i32 to vector<2x128xi32>
    %906 = arith.andi %904, %905 : vector<2x128xi32>
    %907 = arith.sitofp %906 : vector<2x128xi32> to vector<2x128xf32>
    %c5_i32_268 = arith.constant 5 : i32
    %908 = vector.broadcast %c5_i32_268 : i32 to vector<2x128xi32>
    %909 = arith.cmpi sge, %906, %908 : vector<2x128xi32>
    %c2_i32_269 = arith.constant 2 : i32
    %910 = vector.broadcast %c2_i32_269 : i32 to vector<2x128xi32>
    %911 = arith.cmpi sle, %906, %910 : vector<2x128xi32>
    %cst_270 = arith.constant 1.000000e+00 : f32
    %cst_271 = arith.constant 0.000000e+00 : f32
    %912 = vector.broadcast %cst_270 : f32 to vector<2x128xf32>
    %913 = vector.broadcast %cst_271 : f32 to vector<2x128xf32>
    %914 = arith.select %909, %912, %913 : vector<2x128xi1>, vector<2x128xf32>
    %cst_272 = arith.constant 1.000000e+00 : f32
    %cst_273 = arith.constant 0.000000e+00 : f32
    %915 = vector.broadcast %cst_272 : f32 to vector<2x128xf32>
    %916 = vector.broadcast %cst_273 : f32 to vector<2x128xf32>
    %917 = arith.select %911, %915, %916 : vector<2x128xi1>, vector<2x128xf32>
    %918 = arith.subf %914, %917 : vector<2x128xf32>
    %cst_274 = arith.constant 1.000000e+00 : f32
    %919 = vector.broadcast %cst_274 : f32 to vector<2x128xf32>
    %920 = arith.subf %907, %919 : vector<2x128xf32>
    %cst_275 = arith.constant 6.000000e+00 : f32
    %921 = vector.broadcast %cst_275 : f32 to vector<2x128xf32>
    %922 = arith.subf %907, %921 : vector<2x128xf32>
    %cst_276 = arith.constant 2.000000e+00 : f32
    %923 = vector.broadcast %cst_276 : f32 to vector<2x128xf32>
    %924 = arith.mulf %923, %907 : vector<2x128xf32>
    %cst_277 = arith.constant 7.000000e+00 : f32
    %925 = vector.broadcast %cst_277 : f32 to vector<2x128xf32>
    %926 = arith.subf %924, %925 : vector<2x128xf32>
    %927 = arith.select %909, %922, %926 : vector<2x128xi1>, vector<2x128xf32>
    %928 = arith.select %911, %920, %927 : vector<2x128xi1>, vector<2x128xf32>
    %929 = vector.extract_strided_slice %4 {offsets = [0, 14, 0], sizes = [1, 2, 128], strides = [1, 1, 1]} : vector<2x16x128xf32> to vector<1x2x128xf32>
    %930 = vector.shape_cast %929 : vector<1x2x128xf32> to vector<2x128xf32>
    %931 = vector.extract_strided_slice %4 {offsets = [1, 14, 0], sizes = [1, 2, 128], strides = [1, 1, 1]} : vector<2x16x128xf32> to vector<1x2x128xf32>
    %932 = vector.shape_cast %931 : vector<1x2x128xf32> to vector<2x128xf32>
    %933 = vector.broadcast %0 : f32 to vector<2x128xf32>
    %934 = arith.mulf %933, %918 : vector<2x128xf32>
    %935 = vector.broadcast %1 : f32 to vector<2x128xf32>
    %936 = arith.mulf %935, %928 : vector<2x128xf32>
    %937 = arith.subf %934, %936 : vector<2x128xf32>
    %938 = arith.addf %937, %930 : vector<2x128xf32>
    %939 = vector.broadcast %0 : f32 to vector<2x128xf32>
    %940 = arith.mulf %939, %928 : vector<2x128xf32>
    %941 = vector.broadcast %1 : f32 to vector<2x128xf32>
    %942 = arith.mulf %941, %918 : vector<2x128xf32>
    %943 = arith.addf %940, %942 : vector<2x128xf32>
    %944 = arith.addf %943, %932 : vector<2x128xf32>
    %945 = vector.broadcast %0 : f32 to vector<2x128xf32>
    %946 = arith.mulf %938, %945 : vector<2x128xf32>
    %947 = vector.broadcast %1 : f32 to vector<2x128xf32>
    %948 = arith.mulf %944, %947 : vector<2x128xf32>
    %949 = arith.addf %946, %948 : vector<2x128xf32>
    %950 = vector.broadcast %2 : f32 to vector<2x128xf32>
    %951 = arith.mulf %949, %950 : vector<2x128xf32>
    %952 = vector.broadcast %0 : f32 to vector<2x128xf32>
    %953 = arith.mulf %944, %952 : vector<2x128xf32>
    %954 = vector.broadcast %1 : f32 to vector<2x128xf32>
    %955 = arith.mulf %938, %954 : vector<2x128xf32>
    %956 = arith.subf %953, %955 : vector<2x128xf32>
    %957 = vector.broadcast %2 : f32 to vector<2x128xf32>
    %958 = arith.mulf %956, %957 : vector<2x128xf32>
    %cst_278 = arith.constant 5.000000e-01 : f32
    %959 = vector.broadcast %cst_278 : f32 to vector<2x128xf32>
    %960 = arith.addf %951, %959 : vector<2x128xf32>
    %961 = math.floor %960 : vector<2x128xf32>
    %cst_279 = arith.constant -1.000000e+00 : f32
    %cst_280 = arith.constant 1.000000e+00 : f32
    %962 = vector.broadcast %cst_279 : f32 to vector<2x128xf32>
    %963 = arith.maximumf %962, %961 : vector<2x128xf32>
    %964 = vector.broadcast %cst_280 : f32 to vector<2x128xf32>
    %965 = arith.minimumf %964, %963 : vector<2x128xf32>
    %cst_281 = arith.constant 5.000000e-01 : f32
    %966 = vector.broadcast %cst_281 : f32 to vector<2x128xf32>
    %967 = arith.addf %958, %966 : vector<2x128xf32>
    %968 = math.floor %967 : vector<2x128xf32>
    %cst_282 = arith.constant -1.000000e+00 : f32
    %cst_283 = arith.constant 1.000000e+00 : f32
    %969 = vector.broadcast %cst_282 : f32 to vector<2x128xf32>
    %970 = arith.maximumf %969, %968 : vector<2x128xf32>
    %971 = vector.broadcast %cst_283 : f32 to vector<2x128xf32>
    %972 = arith.minimumf %971, %970 : vector<2x128xf32>
    %cst_284 = arith.constant 0.000000e+00 : f32
    %973 = vector.broadcast %cst_284 : f32 to vector<2x128xf32>
    %974 = arith.cmpf oeq, %965, %973 : vector<2x128xf32>
    %cst_285 = arith.constant 0.000000e+00 : f32
    %975 = vector.broadcast %cst_285 : f32 to vector<2x128xf32>
    %976 = arith.cmpf oeq, %972, %975 : vector<2x128xf32>
    %977 = arith.andi %974, %976 : vector<2x128xi1>
    %978 = math.absf %951 : vector<2x128xf32>
    %979 = math.absf %958 : vector<2x128xf32>
    %980 = arith.cmpf oge, %978, %979 : vector<2x128xf32>
    %981 = arith.andi %977, %980 : vector<2x128xi1>
    %cst_286 = arith.constant 0.000000e+00 : f32
    %982 = vector.broadcast %cst_286 : f32 to vector<2x128xf32>
    %983 = arith.cmpf oge, %951, %982 : vector<2x128xf32>
    %cst_287 = arith.constant 1.000000e+00 : f32
    %cst_288 = arith.constant -1.000000e+00 : f32
    %984 = vector.broadcast %cst_287 : f32 to vector<2x128xf32>
    %985 = vector.broadcast %cst_288 : f32 to vector<2x128xf32>
    %986 = arith.select %983, %984, %985 : vector<2x128xi1>, vector<2x128xf32>
    %987 = arith.select %981, %986, %965 : vector<2x128xi1>, vector<2x128xf32>
    %cst_289 = arith.constant dense<true> : vector<2x128xi1>
    %988 = arith.xori %980, %cst_289 : vector<2x128xi1>
    %989 = arith.andi %977, %988 : vector<2x128xi1>
    %cst_290 = arith.constant 0.000000e+00 : f32
    %990 = vector.broadcast %cst_290 : f32 to vector<2x128xf32>
    %991 = arith.cmpf oge, %958, %990 : vector<2x128xf32>
    %cst_291 = arith.constant 1.000000e+00 : f32
    %cst_292 = arith.constant -1.000000e+00 : f32
    %992 = vector.broadcast %cst_291 : f32 to vector<2x128xf32>
    %993 = vector.broadcast %cst_292 : f32 to vector<2x128xf32>
    %994 = arith.select %991, %992, %993 : vector<2x128xi1>, vector<2x128xf32>
    %995 = arith.select %989, %994, %972 : vector<2x128xi1>, vector<2x128xf32>
    %cst_293 = arith.constant 2.500000e+00 : f32
    %996 = vector.broadcast %cst_293 : f32 to vector<2x128xf32>
    %997 = arith.mulf %996, %987 : vector<2x128xf32>
    %cst_294 = arith.constant 3.500000e+00 : f32
    %998 = vector.broadcast %cst_294 : f32 to vector<2x128xf32>
    %999 = arith.addf %998, %997 : vector<2x128xf32>
    %cst_295 = arith.constant 5.000000e-01 : f32
    %1000 = vector.broadcast %cst_295 : f32 to vector<2x128xf32>
    %1001 = arith.mulf %1000, %987 : vector<2x128xf32>
    %1002 = arith.mulf %1001, %987 : vector<2x128xf32>
    %cst_296 = arith.constant 5.000000e-01 : f32
    %1003 = vector.broadcast %cst_296 : f32 to vector<2x128xf32>
    %1004 = arith.addf %1003, %1002 : vector<2x128xf32>
    %1005 = arith.mulf %995, %1004 : vector<2x128xf32>
    %1006 = arith.addf %999, %1005 : vector<2x128xf32>
    %1007 = arith.fptosi %1006 : vector<2x128xf32> to vector<2x128xi32>
    %1008 = arith.xori %1007, %906 : vector<2x128xi32>
    %c1_i32_297 = arith.constant 1 : i32
    %1009 = vector.broadcast %c1_i32_297 : i32 to vector<2x128xi32>
    %1010 = arith.andi %1008, %1009 : vector<2x128xi32>
    %1011 = arith.addi %899, %1010 : vector<2x128xi32>
    %c1_i32_298 = arith.constant 1 : i32
    %1012 = vector.broadcast %c1_i32_298 : i32 to vector<2x128xi32>
    %1013 = arith.shrsi %1008, %1012 : vector<2x128xi32>
    %c1_i32_299 = arith.constant 1 : i32
    %1014 = vector.broadcast %c1_i32_299 : i32 to vector<2x128xi32>
    %1015 = arith.andi %1013, %1014 : vector<2x128xi32>
    %1016 = arith.addi %1011, %1015 : vector<2x128xi32>
    %c2_i32_300 = arith.constant 2 : i32
    %1017 = vector.broadcast %c2_i32_300 : i32 to vector<2x128xi32>
    %1018 = arith.shrsi %1008, %1017 : vector<2x128xi32>
    %c1_i32_301 = arith.constant 1 : i32
    %1019 = vector.broadcast %c1_i32_301 : i32 to vector<2x128xi32>
    %1020 = arith.andi %1018, %1019 : vector<2x128xi32>
    %1021 = arith.addi %1016, %1020 : vector<2x128xi32>
    %c0_i32_302 = arith.constant 0 : i32
    %1022 = vector.broadcast %c0_i32_302 : i32 to vector<2x128xi32>
    %1023 = arith.shli %1007, %1022 : vector<2x128xi32>
    %1024 = arith.addi %902, %1023 : vector<2x128xi32>
    %c16_i32_303 = arith.constant 16 : i32
    %1025 = vector.broadcast %c16_i32_303 : i32 to vector<2x128xi32>
    %1026 = arith.shrsi %1024, %1025 : vector<2x128xi32>
    %c255_i32 = arith.constant 255 : i32
    %1027 = vector.broadcast %c255_i32 : i32 to vector<2x128xi32>
    %1028 = arith.andi %1026, %1027 : vector<2x128xi32>
    %1029 = arith.sitofp %1028 : vector<2x128xi32> to vector<2x128xf32>
    %cst_304 = arith.constant 0.00392156886 : f32
    %1030 = vector.broadcast %cst_304 : f32 to vector<2x128xf32>
    %1031 = arith.mulf %1029, %1030 : vector<2x128xf32>
    %c8_i32_305 = arith.constant 8 : i32
    %1032 = vector.broadcast %c8_i32_305 : i32 to vector<2x128xi32>
    %1033 = arith.shrsi %1024, %1032 : vector<2x128xi32>
    %c255_i32_306 = arith.constant 255 : i32
    %1034 = vector.broadcast %c255_i32_306 : i32 to vector<2x128xi32>
    %1035 = arith.andi %1033, %1034 : vector<2x128xi32>
    %1036 = arith.sitofp %1035 : vector<2x128xi32> to vector<2x128xf32>
    %cst_307 = arith.constant 0.00392156886 : f32
    %1037 = vector.broadcast %cst_307 : f32 to vector<2x128xf32>
    %1038 = arith.mulf %1036, %1037 : vector<2x128xf32>
    %c255_i32_308 = arith.constant 255 : i32
    %1039 = vector.broadcast %c255_i32_308 : i32 to vector<2x128xi32>
    %1040 = arith.andi %1024, %1039 : vector<2x128xi32>
    %1041 = arith.sitofp %1040 : vector<2x128xi32> to vector<2x128xf32>
    %cst_309 = arith.constant 0.00392156886 : f32
    %1042 = vector.broadcast %cst_309 : f32 to vector<2x128xf32>
    %1043 = arith.mulf %1041, %1042 : vector<2x128xf32>
    %c0_310 = arith.constant 0 : index
    %c0_311 = arith.constant 0 : index
    %c0_312 = arith.constant 0 : index
    %1044 = vector.load %arg3[%c0_310, %c0_311, %c0_312] : memref<3x2x128xf32, #tpu.memory_space<vmem>>, vector<1x2x128xf32>
    %1045 = vector.shape_cast %1044 : vector<1x2x128xf32> to vector<2x128xf32>
    %1046 = vector.shape_cast %1031 : vector<2x128xf32> to vector<1x2x128xf32>
    tpu.vector_store %arg3[%c0_310, %c0_311, %c0_312], %1046 {strides = array<i32>} : memref<3x2x128xf32, #tpu.memory_space<vmem>>, vector<1x2x128xf32>,
    %c1_313 = arith.constant 1 : index
    %c0_314 = arith.constant 0 : index
    %c0_315 = arith.constant 0 : index
    %1047 = vector.load %arg3[%c1_313, %c0_314, %c0_315] : memref<3x2x128xf32, #tpu.memory_space<vmem>>, vector<1x2x128xf32>
    %1048 = vector.shape_cast %1047 : vector<1x2x128xf32> to vector<2x128xf32>
    %1049 = vector.shape_cast %1038 : vector<2x128xf32> to vector<1x2x128xf32>
    tpu.vector_store %arg3[%c1_313, %c0_314, %c0_315], %1049 {strides = array<i32>} : memref<3x2x128xf32, #tpu.memory_space<vmem>>, vector<1x2x128xf32>,
    %c2_316 = arith.constant 2 : index
    %c0_317 = arith.constant 0 : index
    %c0_318 = arith.constant 0 : index
    %1050 = vector.load %arg3[%c2_316, %c0_317, %c0_318] : memref<3x2x128xf32, #tpu.memory_space<vmem>>, vector<1x2x128xf32>
    %1051 = vector.shape_cast %1050 : vector<1x2x128xf32> to vector<2x128xf32>
    %1052 = vector.shape_cast %1043 : vector<2x128xf32> to vector<1x2x128xf32>
    tpu.vector_store %arg3[%c2_316, %c0_317, %c0_318], %1052 {strides = array<i32>} : memref<3x2x128xf32, #tpu.memory_space<vmem>>, vector<1x2x128xf32>,
    %1053 = arith.sitofp %1021 : vector<2x128xi32> to vector<2x128xf32>
    %1054 = vector.shape_cast %1053 : vector<2x128xf32> to vector<1x2x128xf32>
    %cst_319 = arith.constant dense<0.000000e+00> : vector<1xf32>
    %1055 = vector.multi_reduction <add>, %1054, %cst_319 [1, 2] : vector<1x2x128xf32> to vector<1xf32>
    %1056 = vector.shape_cast %1055 : vector<1xf32> to vector<1x1x1xf32>
    %1057 = vector.extract %1056[0, 0, 0] : f32 from vector<1x1x1xf32>
    %1058 = vector.extract_strided_slice %3 {offsets = [0, 0, 0], sizes = [1, 2, 128], strides = [1, 1, 1]} : vector<3x2x128xf32> to vector<1x2x128xf32>
    %1059 = vector.shape_cast %1058 : vector<1x2x128xf32> to vector<2x128xf32>
    %1060 = arith.subf %1059, %1031 : vector<2x128xf32>
    %1061 = math.absf %1060 : vector<2x128xf32>
    %1062 = vector.extract_strided_slice %3 {offsets = [1, 0, 0], sizes = [1, 2, 128], strides = [1, 1, 1]} : vector<3x2x128xf32> to vector<1x2x128xf32>
    %1063 = vector.shape_cast %1062 : vector<1x2x128xf32> to vector<2x128xf32>
    %1064 = arith.subf %1063, %1038 : vector<2x128xf32>
    %1065 = math.absf %1064 : vector<2x128xf32>
    %1066 = arith.addf %1061, %1065 : vector<2x128xf32>
    %1067 = vector.extract_strided_slice %3 {offsets = [2, 0, 0], sizes = [1, 2, 128], strides = [1, 1, 1]} : vector<3x2x128xf32> to vector<1x2x128xf32>
    %1068 = vector.shape_cast %1067 : vector<1x2x128xf32> to vector<2x128xf32>
    %1069 = arith.subf %1068, %1043 : vector<2x128xf32>
    %1070 = math.absf %1069 : vector<2x128xf32>
    %1071 = arith.addf %1066, %1070 : vector<2x128xf32>
    %1072 = vector.shape_cast %1071 : vector<2x128xf32> to vector<1x2x128xf32>
    %cst_320 = arith.constant dense<0.000000e+00> : vector<1xf32>
    %1073 = vector.multi_reduction <add>, %1072, %cst_320 [1, 2] : vector<1x2x128xf32> to vector<1xf32>
    %1074 = vector.shape_cast %1073 : vector<1xf32> to vector<1x1x1xf32>
    %1075 = vector.extract %1074[0, 0, 0] : f32 from vector<1x1x1xf32>
    %1076 = tpu.iota {dimensions = array<i32: 1>} : vector<1x128xi32>
    %c0_i32_321 = arith.constant 0 : i32
    %1077 = vector.broadcast %c0_i32_321 : i32 to vector<1x128xi32>
    %1078 = arith.cmpi eq, %1076, %1077 : vector<1x128xi32>
    %cst_322 = arith.constant 0.000000e+00 : f32
    %1079 = vector.broadcast %1057 : f32 to vector<1x128xf32>
    %1080 = vector.broadcast %cst_322 : f32 to vector<1x128xf32>
    %1081 = arith.select %1078, %1079, %1080 : vector<1x128xi1>, vector<1x128xf32>
    %c1_i32_323 = arith.constant 1 : i32
    %1082 = vector.broadcast %c1_i32_323 : i32 to vector<1x128xi32>
    %1083 = arith.cmpi eq, %1076, %1082 : vector<1x128xi32>
    %cst_324 = arith.constant 0.000000e+00 : f32
    %1084 = vector.broadcast %1075 : f32 to vector<1x128xf32>
    %1085 = vector.broadcast %cst_324 : f32 to vector<1x128xf32>
    %1086 = arith.select %1083, %1084, %1085 : vector<1x128xi1>, vector<1x128xf32>
    %1087 = arith.addf %1081, %1086 : vector<1x128xf32>
    %c0_325 = arith.constant 0 : index
    %c0_326 = arith.constant 0 : index
    %1088 = vector.load %arg4[%c0_325, %c0_326] : memref<1x128xf32, #tpu.memory_space<vmem>>, vector<1x128xf32>
    tpu.vector_store %arg4[%c0_325, %c0_326], %1087 {strides = array<i32>} : memref<1x128xf32, #tpu.memory_space<vmem>>, vector<1x128xf32>,
    return
  }
}

</mosaic_0001>

<bundles_post_ra>
// kernel: jpg_transmission_forward.11
= control target key start
LH: loop header
LB: loop body
LE: loop exit
PB: predicated region body
PF: predicated region fallthrough
CT: control target
= control target key end

     0   :  { %10 = vsyncpa [#allocation3], 0  ;;  %s1408_s0 = inlined_call_operand.vmem [shape: f32[3], index: 0, kind: input, shape index: {}]   ;;  %s1409_s1 = inlined_call_operand.vmem [shape: f32[3,2,128], index: 1, kind: input, shape index: {}]   ;;  %s1410_s2 = inlined_call_operand.vmem [shape: f32[2,16,128], index: 2, kind: input, shape index: {}]   ;;  %s1411_s3 = inlined_call_operand.vmem [shape: f32[3,2,128], index: 3, kind: output, shape index: {0}]   ;;  %s1412_s4 = inlined_call_operand.vmem [shape: f32[1,128], index: 4, kind: output, shape index: {1}]  }
   0x1   :  { %s17_s17 = sshll.u32 %s1408_s0, 4  ;;  %s18_s17 = int_to_ptr.vmem [resolvable:$true] %s17_s17 }
   0x2   :  { %s806_s18 = scalar_lea.vmem %s18_s17, 16  ;;  %p811_p1 = scmp.lt.s32.totalorder %s18_s17, %s18_s17 }
   0x3   :  { %p807_p0 = scmp.ne.s32.totalorder %s18_s17, %s806_s18  ;;  %p812_p2 = scmp.lt.s32.totalorder %s806_s18, %s806_s18 }
   0x5   :  { %p813_p3 = por %p812_p2, %p811_p1 }
   0x7   :  { %p814_p4 = pnand %p813_p3, %p807_p0 }
   0x9   :  { %817 = shalt.err (!%p814_p4)
}
   0xa   :  { %s820_s19 = smov [#allocation2]  }
   0xb   :  { %20 = dma.vmem_to_smem %s18_s17, 16, %s820_s19, [#allocation3]  }
   0xc   :  { %818 = dma.done.wait [#allocation3], 16  }
   0xd   :  { %819 = vsyncadd [#allocation3], 4294967280 }
   0xe   :  { %28 = sfence }
   0xf   :  { %v32_v0 = vld [vmem:[%s1409_s1] sm:$0x3]  ;;  %v33_v1 = vld [vmem:[%s1409_s1 + $0x2] sm:$0x3]  ;;  %v34_v2 = vld [vmem:[%s1409_s1 + $0x4] sm:$0x3] }
  0x10   :  { %v39_v3 = vmul.f32 255.0, %v32_v0  ;;  %v45_v4 = vmul.f32 255.0, %v33_v1  ;;  %v51_v5 = vmul.f32 255.0, %v34_v2  ;;  %s29_s25 = sld [smem:[#allocation2]]  ;;  %s729_s26 = sld [smem:[#allocation2 + $0x1]]  ;;  %v864_v27 = vld [vmem:[%s1410_s2] sm:$0xff] }
  0x11   :  { %s730_s27 = sld [smem:[#allocation2 + $0x2]]  ;;  %v869_v28 = vld [vmem:[%s1410_s2 + $0x10] sm:$0xff]  ;;  %v152_v30 = vrot.slane %v864_v27, 2  ;;  %v229_v35 = vrot.slane %v864_v27, 4  ;;  %v305_v38 = vrot.slane %v864_v27, 6  ;;  %v887_v40 = vld [vmem:[%s1410_s2 + $0x8] sm:$0xff] }
  0x12   :  { %v40_v6 = vadd.f32 0.5, %v39_v3  ;;  %v46_v7 = vadd.f32 0.5, %v45_v4  ;;  %v52_v8 = vadd.f32 0.5, %v51_v5  ;;  %v159_v31 = vrot.slane %v869_v28, 2 }
  0x13   :  { %v235_v37 = vrot.slane %v869_v28, 4  ;;  %v311_v39 = vrot.slane %v869_v28, 6  ;;  %v454_v48 = vrot.slane %v887_v40, 2  ;;  %v821_v51 = vmov 0.0  }
  0x14   :  { %v41_v9 = vfloor.f32 %v40_v6  ;;  %v47_v10 = vfloor.f32 %v46_v7  ;;  %v53_v11 = vfloor.f32 %v52_v8  ;;  %vm823_vm14 = vmmov 1  }
  0x16   :  { %v42_v12 = vmax.f32 %v41_v9, 0.0  ;;  %v48_v13 = vmax.f32 %v47_v10, 0.0  ;;  %v54_v14 = vmax.f32 %v53_v11, 0.0  ;;  %v879_v36 = vstv %s29_s25 }
  0x17   :  { %v891_v42 = vstv %s729_s26  ;;  %v893_v43 = vstv %s730_s27 }
  0x18   :  { %v43_v15 = vmin.f32 %v42_v12, 255.0  ;;  %v49_v16 = vmin.f32 %v48_v13, 255.0  ;;  %v55_v17 = vmin.f32 %v54_v14, 255.0 }
  0x1a   :  { %v773_v18 = vtrunc.f32 %v43_v15  ;;  %v775_v19 = vtrunc.f32 %v49_v16  ;;  %v777_v20 = vtrunc.f32 %v55_v17 }
  0x1c   :  { %v774_v21 = vcvt.f32.s32 %v773_v18  ;;  %v776_v22 = vcvt.f32.s32 %v775_v19  ;;  %v778_v23 = vcvt.f32.s32 %v777_v20 }
  0x1e   :  { %v57_v24 = vshll.u32 %v774_v21, 16  ;;  %v58_v25 = vshll.u32 %v776_v22, 8 }
  0x20   :  { %v59_v26 = vadd.s32 %v58_v25, %v57_v24 }
  0x22   :  { %v871_v29 = vadd.s32 %v778_v23, %v59_v26 }
  0x24   :  { %v61_v32 = vshra.s32 %v871_v29, 21  ;;  %v134_v33 = vshra.s32 %v871_v29, 18  ;;  %v212_v34 = vshra.s32 %v871_v29, 15  ;;  %v288_v46 = vshra.s32 %v871_v29, 12 }
  0x25   :  { %v364_v47 = vshra.s32 %v871_v29, 9  ;;  %v436_v57 = vshra.s32 %v871_v29, 6 }
  0x26   :  { %v889_v41 = vand.u32 7, %v61_v32  ;;  %v895_v44 = vand.u32 7, %v134_v33  ;;  %v897_v45 = vand.u32 7, %v212_v34  ;;  %v921_v61 = vand.u32 7, %v288_v46 }
  0x28   :  { %v63_v49 = vcvt.s32.f32 %v889_v41  ;;  %vm64_vm0 = vcmp.ge.s32.totalorder %v889_v41, 5  ;;  %vm65_vm1 = vcmp.le.s32.totalorder %v889_v41, 2  ;;  %v136_v50 = vcvt.s32.f32 %v895_v44 }
  0x29   :  { %v66_v52 = vsel %vm64_vm0, 1.0, %v821_v51  ;;  %v67_v53 = vsel %vm65_vm1, 1.0, %v821_v51  ;;  %vm137_vm2 = vcmp.ge.s32.totalorder %v895_v44, 5  ;;  %vm138_vm3 = vcmp.le.s32.totalorder %v895_v44, 2 }
  0x2a   :  { %v68_v54 = vsub.f32 %v66_v52, %v67_v53  ;;  %v732_v55 = vadd.f32 -6.0, %v63_v49  ;;  %v71_v56 = vmul.f32 2.0, %v63_v49  ;;  %v731_v58 = vadd.f32 -1.0, %v63_v49 }
  0x2b   :  { %v139_v59 = vsel %vm137_vm2, 1.0, %v821_v51  ;;  %v140_v60 = vsel %vm138_vm3, 1.0, %v821_v51  ;;  %v736_v0 = vadd.f32 -1.0, %v136_v50  ;;  %v737_v1 = vadd.f32 -6.0, %v136_v50 }
  0x2c   :  { %v733_v62 = vadd.f32 -7.0, %v71_v56  ;;  %v141_v63 = vsub.f32 %v139_v59, %v140_v60  ;;  %v144_v2 = vmul.f32 2.0, %v136_v50  ;;  %v214_v3 = vcvt.s32.f32 %v897_v45 }
  0x2d   :  { %vm215_vm4 = vcmp.ge.s32.totalorder %v897_v45, 5  ;;  %vm216_vm5 = vcmp.le.s32.totalorder %v897_v45, 2  ;;  %v76_v5 = vmul.f32 %v879_v36, %v68_v54  ;;  %v82_v6 = vmul.f32 %v891_v42, %v68_v54 }
  0x2e   :  { %v73_v4 = vsel %vm64_vm0, %v732_v55, %v733_v62  ;;  %v217_v7 = vsel %vm215_vm4, 1.0, %v821_v51  ;;  %v738_v9 = vadd.f32 -7.0, %v144_v2  ;;  %v148_v10 = vmul.f32 %v141_v63, %v879_v36 }
  0x2f   :  { %v74_v8 = vsel %vm65_vm1, %v731_v58, %v73_v4  ;;  %v218_v11 = vsel %vm216_vm5, 1.0, %v821_v51  ;;  %v156_v14 = vmul.f32 %v141_v63, %v891_v42  ;;  %v741_v17 = vadd.f32 -1.0, %v214_v3 }
  0x30   :  { %v78_v12 = vmul.f32 %v891_v42, %v74_v8  ;;  %v81_v13 = vmul.f32 %v879_v36, %v74_v8  ;;  %v219_v15 = vsub.f32 %v217_v7, %v218_v11  ;;  %v146_v16 = vsel %vm137_vm2, %v737_v1, %v738_v9 }
  0x31   :  { %v742_v18 = vadd.f32 -6.0, %v214_v3  ;;  %v222_v19 = vmul.f32 2.0, %v214_v3  ;;  %v147_v22 = vsel %vm138_vm3, %v736_v0, %v146_v16  ;;  %vm291_vm6 = vcmp.ge.s32.totalorder %v921_v61, 5 }
  0x32   :  { %v79_v20 = vsub.f32 %v76_v5, %v78_v12  ;;  %v83_v21 = vadd.f32 %v82_v6, %v81_v13  ;;  %v149_v23 = vmul.f32 %v147_v22, %v891_v42  ;;  %v155_v24 = vmul.f32 %v147_v22, %v879_v36 }
  0x33   :  { %v743_v25 = vadd.f32 -7.0, %v222_v19  ;;  %v950_v26 = vmul.f32 %v219_v15, %v879_v36  ;;  %v233_v34 = vmul.f32 %v219_v15, %v891_v42  ;;  %vm292_vm7 = vcmp.le.s32.totalorder %v921_v61, 2 }
  0x34   :  { %v80_v32 = vadd.f32 %v79_v20, %v864_v27  ;;  %v84_v33 = vadd.f32 %v83_v21, %v869_v28  ;;  %v150_v46 = vsub.f32 %v148_v10, %v149_v23  ;;  %v157_v49 = vadd.f32 %v156_v14, %v155_v24 }
  0x35   :  { %v224_v50 = vsel %vm215_vm4, %v742_v18, %v743_v25  ;;  %v293_v52 = vsel %vm291_vm6, 1.0, %v821_v51  ;;  %v294_v62 = vsel %vm292_vm7, 1.0, %v821_v51  ;;  %v984_v7 = vand.u32 7, %v364_v47 }
  0x36   :  { %v85_v53 = vmul.f32 %v80_v32, %v879_v36  ;;  %v86_v54 = vmul.f32 %v84_v33, %v891_v42  ;;  %v90_v55 = vmul.f32 %v84_v33, %v879_v36  ;;  %v91_v56 = vmul.f32 %v80_v32, %v891_v42 }
  0x37   :  { %v154_v58 = vadd.f32 %v152_v30, %v150_v46  ;;  %v161_v59 = vadd.f32 %v159_v31, %v157_v49  ;;  %v225_v60 = vsel %vm216_vm5, %v741_v17, %v224_v50  ;;  %v514_v8 = vshra.s32 %v871_v29, 3 }
  0x38   :  { %v87_v63 = vadd.f32 %v86_v54, %v85_v53  ;;  %v92_v0 = vsub.f32 %v90_v55, %v91_v56  ;;  %v227_v1 = vmul.f32 %v225_v60, %v891_v42  ;;  %v232_v2 = vmul.f32 %v225_v60, %v879_v36 }
  0x39   :  { %v162_v3 = vmul.f32 %v154_v58, %v879_v36  ;;  %v163_v30 = vmul.f32 %v161_v59, %v891_v42  ;;  %v166_v4 = vmul.f32 %v161_v59, %v879_v36  ;;  %v167_v31 = vmul.f32 %v154_v58, %v891_v42 }
  0x3a   :  { %v89_v5 = vmul.f32 %v893_v43, %v87_v63  ;;  %v93_v6 = vmul.f32 %v92_v0, %v893_v43  ;;  %v290_v11 = vcvt.s32.f32 %v921_v61  ;;  %v988_v12 = vsub.f32 %v293_v52, %v294_v62 }
  0x3b   :  { %v164_v9 = vadd.f32 %v163_v30, %v162_v3  ;;  %v168_v10 = vsub.f32 %v166_v4, %v167_v31  ;;  %v228_v15 = vsub.f32 %v950_v26, %v227_v1  ;;  %v234_v16 = vadd.f32 %v233_v34, %v232_v2 }
  0x3c   :  { %v94_v13 = vadd.f32 0.5, %v89_v5  ;;  %v98_v14 = vadd.f32 0.5, %v93_v6  ;;  %v105_v17 = vand.u32 2147483647, %v89_v5  ;;  %v106_v18 = vand.u32 2147483647, %v93_v6 }
  0x3d   :  { %v165_v19 = vmul.f32 %v164_v9, %v893_v43  ;;  %v169_v47 = vmul.f32 %v168_v10, %v893_v43  ;;  %v746_v22 = vadd.f32 -1.0, %v290_v11  ;;  %v747_v23 = vadd.f32 -6.0, %v290_v11 }
  0x3e   :  { %v95_v20 = vfloor.f32 %v94_v13  ;;  %v99_v21 = vfloor.f32 %v98_v14  ;;  %vm109_vm8 = vcmp.ge.f32.partialorder %v89_v5, 0.0  ;;  %vm114_vm9 = vcmp.ge.f32.partialorder %v93_v6, 0.0 }
  0x3f   :  { %v170_v24 = vadd.f32 0.5, %v165_v19  ;;  %v174_v25 = vadd.f32 0.5, %v169_v47  ;;  %v181_v46 = vand.u32 2147483647, %v165_v19  ;;  %v182_v49 = vand.u32 2147483647, %v169_v47 }
  0x40   :  { %v734_v32 = vclamps-f32 %v95_v20, 1.0  ;;  %v735_v33 = vclamps-f32 %v99_v21, 1.0  ;;  %vm993_vm10 = vcmp.ge.f32.partialorder %v105_v17, %v106_v18  ;;  %vm185_vm11 = vcmp.ge.f32.partialorder %v165_v19, 0.0 }
  0x41   :  { %v171_v34 = vfloor.f32 %v170_v24  ;;  %v175_v50 = vfloor.f32 %v174_v25  ;;  %v822_v52 = vmov -1.0   ;;  %vm1001_vm15 = vmxor %vm993_vm10, %vm823_vm14  ;;  %vm190_vm0 = vcmp.ge.f32.partialorder %v169_v47, 0.0 }
  0x42   :  { %vm102_vm12 = vcmp.eq.f32.partialorder %v734_v32, 0.0  ;;  %vm103_vm13 = vcmp.eq.f32.partialorder %v735_v33, 0.0  ;;  %v110_v53 = vsel %vm109_vm8, 1.0, %v822_v52  ;;  %v231_v59 = vadd.f32 %v229_v35, %v228_v15 }
  0x43   :  { %vm1005_vm1 = vmand %vm102_vm12, %vm103_vm13  ;;  %v739_v56 = vclamps-f32 %v171_v34, 1.0  ;;  %v740_v58 = vclamps-f32 %v175_v50, 1.0  ;;  %v237_v60 = vadd.f32 %v235_v37, %v234_v16  ;;  %v115_v62 = vsel %vm114_vm9, 1.0, %v822_v52 }
  0x44   :  { %vm108_vm2 = vmand %vm1005_vm1, %vm993_vm10  ;;  %vm1019_vm3 = vcmp.ge.f32.partialorder %v181_v46, %v182_v49  ;;  %v186_v0 = vsel %vm185_vm11, 1.0, %v822_v52  ;;  %v298_v1 = vmul.f32 2.0, %v290_v11  ;;  %v238_v37 = vmul.f32 %v231_v59, %v879_v36 }
  0x45   :  { %v111_v35 = vsel %vm108_vm2, %v110_v53, %v734_v32  ;;  %vm113_vm4 = vmand %vm1005_vm1, %vm1001_vm15  ;;  %vm178_vm5 = vcmp.eq.f32.partialorder %v739_v56, 0.0  ;;  %vm179_vm8 = vcmp.eq.f32.partialorder %v740_v58, 0.0  ;;  %v191_v4 = vsel %vm190_vm0, 1.0, %v822_v52 }
  0x46   :  { %v117_v2 = vmul.f32 2.5, %v111_v35  ;;  %v119_v3 = vmul.f32 0.5, %v111_v35  ;;  %vm1030_vm9 = vmand %vm178_vm5, %vm179_vm8  ;;  %v239_v31 = vmul.f32 %v237_v60, %v891_v42  ;;  %v242_v5 = vmul.f32 %v237_v60, %v879_v36 }
  0x47   :  { %vm184_vm10 = vmand %vm1030_vm9, %vm1019_vm3  ;;  %v243_v6 = vmul.f32 %v231_v59, %v891_v42  ;;  %v748_v9 = vadd.f32 -7.0, %v298_v1  ;;  %v302_v10 = vmul.f32 %v988_v12, %v879_v36  ;;  %v116_v11 = vsel %vm113_vm4, %v115_v62, %v735_v33 }
  0x48   :  { %v120_v13 = vmul.f32 %v119_v3, %v111_v35  ;;  %v187_v14 = vsel %vm184_vm10, %v186_v0, %v739_v56  ;;  %vm1048_vm11 = vmxor %vm1019_vm3, %vm823_vm14  ;;  %v240_v16 = vadd.f32 %v239_v31, %v238_v37  ;;  %v118_v20 = vadd.f32 3.5, %v117_v2 }
  0x49   :  { %vm189_vm12 = vmand %vm1030_vm9, %vm1048_vm11  ;;  %v193_v17 = vmul.f32 2.5, %v187_v14  ;;  %v195_v18 = vmul.f32 0.5, %v187_v14  ;;  %v244_v19 = vsub.f32 %v242_v5, %v243_v6  ;;  %v300_v47 = vsel %vm291_vm6, %v747_v23, %v748_v9 }
  0x4a   :  { %v121_v21 = vadd.f32 0.5, %v120_v13  ;;  %v241_v24 = vmul.f32 %v240_v16, %v893_v43  ;;  %v301_v25 = vsel %vm292_vm7, %v746_v22, %v300_v47  ;;  %v1065_v49 = vand.u32 7, %v436_v57 }
  0x4b   :  { %v196_v32 = vmul.f32 %v195_v18, %v187_v14  ;;  %v245_v33 = vmul.f32 %v244_v19, %v893_v43  ;;  %v303_v46 = vmul.f32 %v301_v25, %v891_v42  ;;  %v192_v34 = vsel %vm189_vm12, %v191_v4, %v740_v58 }
  0x4c   :  { %v122_v26 = vmul.f32 %v121_v21, %v116_v11  ;;  %v194_v50 = vadd.f32 3.5, %v193_v17  ;;  %v246_v23 = vadd.f32 0.5, %v241_v24  ;;  %v257_v55 = vand.u32 2147483647, %v241_v24 }
  0x4d   :  { %v197_v53 = vadd.f32 0.5, %v196_v32  ;;  %v250_v54 = vadd.f32 0.5, %v245_v33  ;;  %v258_v56 = vand.u32 2147483647, %v245_v33  ;;  %v304_v22 = vsub.f32 %v302_v10, %v303_v46 }
  0x4e   :  { %v123_v59 = vadd.f32 %v122_v26, %v118_v20  ;;  %v247_v60 = vfloor.f32 %v246_v23  ;;  %v309_v62 = vmul.f32 %v988_v12, %v891_v42  ;;  %vm261_vm6 = vcmp.ge.f32.partialorder %v241_v24, 0.0 }
  0x4f   :  { %v198_v63 = vmul.f32 %v197_v53, %v192_v34  ;;  %v251_v0 = vfloor.f32 %v250_v54  ;;  %vm367_vm7 = vcmp.ge.s32.totalorder %v984_v7, 5  ;;  %vm266_vm13 = vcmp.ge.f32.partialorder %v245_v33, 0.0 }
  0x50   :  { %v779_v57 = vtrunc.f32 %v123_v59  ;;  %v744_v1 = vclamps-f32 %v247_v60, 1.0  ;;  %v308_v58 = vmul.f32 %v301_v25, %v879_v36  ;;  %vm1071_vm15 = vcmp.ge.f32.partialorder %v257_v55, %v258_v56 }
  0x51   :  { %v199_v35 = vadd.f32 %v198_v63, %v194_v50  ;;  %v745_v37 = vclamps-f32 %v251_v0, 1.0  ;;  %v307_v3 = vadd.f32 %v305_v38, %v304_v22  ;;  %vm368_vm1 = vcmp.le.s32.totalorder %v984_v7, 2  ;;  %vm1085_vm3 = vmxor %vm1071_vm15, %vm823_vm14 }
  0x52   :  { %v1077_v12 = vcvt.f32.s32 %v779_v57  ;;  %vm254_vm0 = vcmp.eq.f32.partialorder %v744_v1, 0.0  ;;  %v310_v30 = vadd.f32 %v309_v62, %v308_v58  ;;  %v262_v31 = vsel %vm261_vm6, 1.0, %v822_v52 }
  0x53   :  { %v781_v4 = vtrunc.f32 %v199_v35  ;;  %vm255_vm2 = vcmp.eq.f32.partialorder %v745_v37, 0.0  ;;  %v366_v27 = vcvt.s32.f32 %v984_v7  ;;  %v267_v9 = vsel %vm266_vm13, 1.0, %v822_v52 }
  0x54   :  { %v125_v38 = vxor.u32 %v1077_v12, %v889_v41  ;;  %vm1092_vm4 = vmand %vm254_vm0, %vm255_vm2  ;;  %v313_v10 = vadd.f32 %v311_v39, %v310_v30  ;;  %v369_v11 = vsel %vm367_vm7, 1.0, %v821_v51  ;;  %v314_v41 = vmul.f32 %v307_v3, %v879_v36 }
  0x55   :  { %v1103_v13 = vcvt.f32.s32 %v781_v4  ;;  %vm260_vm5 = vmand %vm1092_vm4, %vm1071_vm15  ;;  %v319_v14 = vmul.f32 %v307_v3, %v891_v42  ;;  %v370_v28 = vsel %vm368_vm1, 1.0, %v821_v51  ;;  %v374_v20 = vmul.f32 2.0, %v366_v27 }
  0x56   :  { %v126_v39 = vand.u32 1, %v125_v38  ;;  %v127_v15 = vshra.s32 %v125_v38, 1  ;;  %v130_v16 = vshra.s32 %v125_v38, 2  ;;  %v263_v17 = vsel %vm260_vm5, %v262_v31, %v744_v1  ;;  %vm265_vm8 = vmand %vm1092_vm4, %vm1085_vm3 }
  0x57   :  { %v201_v18 = vxor.u32 %v1103_v13, %v895_v44  ;;  %v269_v19 = vmul.f32 2.5, %v263_v17  ;;  %v271_v47 = vmul.f32 0.5, %v263_v17  ;;  %v315_v25 = vmul.f32 %v313_v10, %v891_v42 }
  0x58   :  { %v128_v21 = vand.u32 1, %v127_v15  ;;  %v131_v24 = vand.u32 1, %v130_v16  ;;  %v318_v32 = vmul.f32 %v313_v10, %v879_v36  ;;  %v371_v26 = vsub.f32 %v369_v11, %v370_v28 }
  0x59   :  { %v204_v33 = vshra.s32 %v201_v18, 1  ;;  %v207_v46 = vshra.s32 %v201_v18, 2  ;;  %v752_v34 = vadd.f32 -6.0, %v366_v27  ;;  %v272_v44 = vmul.f32 %v271_v47, %v263_v17  ;;  %v1142_v17 = vld [vmem:[%s1410_s2 + $0x18] sm:$0xff] }
  0x5a   :  { %v129_v50 = vadd.s32 %v128_v21, %v126_v39  ;;  %v316_v23 = vadd.f32 %v315_v25, %v314_v41  ;;  %v320_v53 = vsub.f32 %v318_v32, %v319_v14  ;;  %v202_v54 = vand.u32 1, %v201_v18 }
  0x5b   :  { %v268_v55 = vsel %vm265_vm8, %v267_v9, %v745_v37  ;;  %v270_v56 = vadd.f32 3.5, %v269_v19  ;;  %v753_v59 = vadd.f32 -7.0, %v374_v20  ;;  %v273_v22 = vadd.f32 0.5, %v272_v44 }
  0x5c   :  { %v132_v60 = vadd.s32 %v131_v24, %v129_v50  ;;  %v317_v62 = vmul.f32 %v316_v23, %v893_v43  ;;  %v321_v63 = vmul.f32 %v320_v53, %v893_v43  ;;  %v205_v0 = vand.u32 1, %v204_v33 }
  0x5d   :  { %v208_v57 = vand.u32 1, %v207_v46  ;;  %v751_v1 = vadd.f32 -1.0, %v366_v27  ;;  %v438_v58 = vcvt.s32.f32 %v1065_v49  ;;  %v274_v35 = vmul.f32 %v273_v22, %v268_v55 }
  0x5e   :  { %v322_v2 = vadd.f32 0.5, %v317_v62  ;;  %v326_v3 = vadd.f32 0.5, %v321_v63  ;;  %v376_v30 = vsel %vm367_vm7, %v752_v34, %v753_v59  ;;  %v203_v37 = vadd.s32 %v202_v54, %v132_v60 }
  0x5f   :  { %v333_v4 = vand.u32 2147483647, %v317_v62  ;;  %v334_v31 = vand.u32 2147483647, %v321_v63  ;;  %v378_v5 = vmul.f32 %v371_v26, %v879_v36  ;;  %v275_v38 = vadd.f32 %v274_v35, %v270_v56 }
  0x60   :  { %v323_v6 = vfloor.f32 %v322_v2  ;;  %v327_v9 = vfloor.f32 %v326_v3  ;;  %v383_v10 = vmul.f32 %v371_v26, %v891_v42  ;;  %vm337_vm9 = vcmp.ge.f32.partialorder %v317_v62, 0.0 }
  0x61   :  { %v377_v27 = vsel %vm368_vm1, %v751_v1, %v376_v30  ;;  %vm439_vm10 = vcmp.ge.s32.totalorder %v1065_v49, 5  ;;  %vm440_vm11 = vcmp.le.s32.totalorder %v1065_v49, 2  ;;  %v783_v11 = vtrunc.f32 %v275_v38 }
  0x62   :  { %v749_v41 = vclamps-f32 %v323_v6, 1.0  ;;  %v750_v14 = vclamps-f32 %v327_v9, 1.0  ;;  %vm342_vm12 = vcmp.ge.f32.partialorder %v321_v63, 0.0  ;;  %v206_v28 = vadd.s32 %v205_v0, %v203_v37 }
  0x63   :  { %vm1133_vm6 = vcmp.ge.f32.partialorder %v333_v4, %v334_v31  ;;  %v379_v15 = vmul.f32 %v377_v27, %v891_v42  ;;  %v382_v16 = vmul.f32 %v377_v27, %v879_v36  ;;  %v1144_v18 = vcvt.f32.s32 %v783_v11 }
  0x64   :  { %vm330_vm7 = vcmp.eq.f32.partialorder %v749_v41, 0.0  ;;  %vm331_vm13 = vcmp.eq.f32.partialorder %v750_v14, 0.0  ;;  %v338_v19 = vsel %vm337_vm9, 1.0, %v822_v52  ;;  %vm1151_vm15 = vmxor %vm1133_vm6, %vm823_vm14  ;;  %v461_v25 = vrot.slane %v1142_v17, 2 }
  0x65   :  { %vm1155_vm0 = vmand %vm330_vm7, %vm331_vm13  ;;  %v380_v21 = vsub.f32 %v378_v5, %v379_v15  ;;  %v384_v24 = vadd.f32 %v383_v10, %v382_v16  ;;  %v1161_v32 = vand.u32 7, %v871_v29  ;;  %v277_v33 = vxor.u32 %v1144_v18, %v897_v45 }
  0x66   :  { %vm336_vm1 = vmand %vm1155_vm0, %vm1133_vm6  ;;  %v343_v46 = vsel %vm342_vm12, 1.0, %v822_v52  ;;  %v441_v26 = vsel %vm439_vm10, 1.0, %v821_v51  ;;  %v1176_v34 = vand.u32 7, %v514_v8  ;;  %v442_v23 = vsel %vm440_vm11, 1.0, %v821_v51 }
  0x67   :  { %v339_v50 = vsel %vm336_vm1, %v338_v19, %v749_v41  ;;  %v381_v44 = vadd.f32 %v380_v21, %v887_v40  ;;  %v385_v45 = vadd.f32 %v384_v24, %v1142_v17  ;;  %v209_v53 = vadd.s32 %v208_v57, %v206_v28  ;;  %vm341_vm2 = vmand %vm1155_vm0, %vm1151_vm15 }
  0x68   :  { %v278_v54 = vand.u32 1, %v277_v33  ;;  %v280_v55 = vshra.s32 %v277_v33, 1  ;;  %v446_v56 = vmul.f32 2.0, %v438_v58  ;;  %v345_v29 = vmul.f32 2.5, %v339_v50 }
  0x69   :  { %v347_v8 = vmul.f32 0.5, %v339_v50  ;;  %v386_v59 = vmul.f32 %v381_v44, %v879_v36  ;;  %v387_v60 = vmul.f32 %v385_v45, %v891_v42  ;;  %v390_v22 = vmul.f32 %v385_v45, %v879_v36 }
  0x6a   :  { %v443_v62 = vsub.f32 %v441_v26, %v442_v23  ;;  %v756_v63 = vadd.f32 -1.0, %v438_v58  ;;  %v757_v0 = vadd.f32 -6.0, %v438_v58  ;;  %v283_v57 = vshra.s32 %v277_v33, 2 }
  0x6b   :  { %v348_v1 = vmul.f32 %v347_v8, %v339_v50  ;;  %v388_v35 = vadd.f32 %v387_v60, %v386_v59  ;;  %v391_v2 = vmul.f32 %v381_v44, %v891_v42  ;;  %v279_v3 = vadd.s32 %v278_v54, %v209_v53 }
  0x6c   :  { %v281_v30 = vand.u32 1, %v280_v55  ;;  %v344_v37 = vsel %vm341_vm2, %v343_v46, %v750_v14  ;;  %v758_v4 = vadd.f32 -7.0, %v446_v56  ;;  %v346_v31 = vadd.f32 3.5, %v345_v29 }
  0x6d   :  { %v349_v5 = vadd.f32 0.5, %v348_v1  ;;  %v389_v38 = vmul.f32 %v388_v35, %v893_v43  ;;  %v392_v6 = vsub.f32 %v390_v22, %v391_v2  ;;  %v450_v10 = vmul.f32 %v443_v62, %v879_v36 }
  0x6e   :  { %v448_v9 = vsel %vm439_vm10, %v757_v0, %v758_v4  ;;  %v458_v58 = vmul.f32 %v443_v62, %v891_v42  ;;  %vm517_vm3 = vcmp.ge.s32.totalorder %v1176_v34, 5  ;;  %v516_v14 = vcvt.s32.f32 %v1176_v34 }
  0x6f   :  { %v350_v27 = vmul.f32 %v349_v5, %v344_v37  ;;  %v393_v11 = vmul.f32 %v392_v6, %v893_v43  ;;  %v394_v41 = vadd.f32 0.5, %v389_v38  ;;  %v282_v28 = vadd.s32 %v281_v30, %v279_v3 }
  0x70   :  { %v284_v39 = vand.u32 1, %v283_v57  ;;  %v449_v15 = vsel %vm440_vm11, %v756_v63, %v448_v9  ;;  %vm518_vm4 = vcmp.le.s32.totalorder %v1176_v34, 2  ;;  %v519_v20 = vsel %vm517_vm3, 1.0, %v821_v51 }
  0x71   :  { %v351_v16 = vadd.f32 %v350_v27, %v346_v31  ;;  %v395_v19 = vfloor.f32 %v394_v41  ;;  %v398_v47 = vadd.f32 0.5, %v393_v11  ;;  %v405_v21 = vand.u32 2147483647, %v389_v38 }
  0x72   :  { %v406_v24 = vand.u32 2147483647, %v393_v11  ;;  %v451_v33 = vmul.f32 %v449_v15, %v891_v42  ;;  %v457_v46 = vmul.f32 %v449_v15, %v879_v36  ;;  %v520_v44 = vsel %vm518_vm4, 1.0, %v821_v51 }
  0x73   :  { %v754_v26 = vclamps-f32 %v395_v19, 1.0  ;;  %v399_v50 = vfloor.f32 %v398_v47  ;;  %v761_v45 = vadd.f32 -1.0, %v516_v14  ;;  %vm409_vm5 = vcmp.ge.f32.partialorder %v389_v38, 0.0 }
  0x74   :  { %v452_v23 = vsub.f32 %v450_v10, %v451_v33  ;;  %v459_v53 = vadd.f32 %v458_v58, %v457_v46  ;;  %v524_v54 = vmul.f32 2.0, %v516_v14  ;;  %v785_v55 = vtrunc.f32 %v351_v16 }
  0x75   :  { %v755_v56 = vclamps-f32 %v399_v50, 1.0  ;;  %vm402_vm8 = vcmp.eq.f32.partialorder %v754_v26, 0.0  ;;  %v762_v29 = vadd.f32 -6.0, %v516_v14  ;;  %vm1210_vm9 = vcmp.ge.f32.partialorder %v405_v21, %v406_v24 }
  0x76   :  { %v456_v59 = vadd.f32 %v454_v48, %v452_v23  ;;  %v463_v60 = vadd.f32 %v461_v25, %v459_v53  ;;  %v763_v22 = vadd.f32 -7.0, %v524_v54  ;;  %v410_v62 = vsel %vm409_vm5, 1.0, %v822_v52  ;;  %vm1222_vm11 = vmxor %vm1210_vm9, %vm823_vm14 }
  0x77   :  { %vm403_vm10 = vcmp.eq.f32.partialorder %v755_v56, 0.0  ;;  %vm414_vm12 = vcmp.ge.f32.partialorder %v393_v11, 0.0  ;;  %v521_v0 = vsub.f32 %v519_v20, %v520_v44  ;;  %v1234_v2 = vcvt.f32.s32 %v785_v55 }
  0x78   :  { %vm1226_vm6 = vmand %vm402_vm8, %vm403_vm10  ;;  %v464_v48 = vmul.f32 %v456_v59, %v879_v36  ;;  %v465_v25 = vmul.f32 %v463_v60, %v891_v42  ;;  %v468_v1 = vmul.f32 %v463_v60, %v879_v36  ;;  %v469_v35 = vmul.f32 %v456_v59, %v891_v42 }
  0x79   :  { %vm408_vm7 = vmand %vm1226_vm6, %vm1210_vm9  ;;  %v526_v3 = vsel %vm517_vm3, %v762_v29, %v763_v22  ;;  %v531_v30 = vrot.slane %v887_v40, 4  ;;  %v537_v37 = vrot.slane %v1142_v17, 4  ;;  %v285_v6 = vadd.s32 %v284_v39, %v282_v28 }
  0x7a   :  { %v411_v4 = vsel %vm408_vm7, %v410_v62, %v754_v26  ;;  %v466_v31 = vadd.f32 %v465_v25, %v464_v48  ;;  %v470_v5 = vsub.f32 %v468_v1, %v469_v35  ;;  %v527_v38 = vsel %vm518_vm4, %v761_v45, %v526_v3  ;;  %vm413_vm13 = vmand %vm1226_vm6, %vm1222_vm11 }
  0x7b   :  { %v415_v9 = vsel %vm414_vm12, 1.0, %v822_v52  ;;  %v528_v10 = vmul.f32 %v521_v0, %v879_v36  ;;  %v1250_v58 = vcvt.s32.f32 %v1161_v32  ;;  %v417_v27 = vmul.f32 2.5, %v411_v4 }
  0x7c   :  { %v419_v41 = vmul.f32 0.5, %v411_v4  ;;  %v467_v14 = vmul.f32 %v466_v31, %v893_v43  ;;  %v471_v15 = vmul.f32 %v470_v5, %v893_v43  ;;  %v1260_v11 = vxor.u32 %v1234_v2, %v921_v61 }
  0x7d   :  { %v529_v28 = vmul.f32 %v527_v38, %v891_v42  ;;  %v534_v39 = vmul.f32 %v527_v38, %v879_v36  ;;  %v535_v16 = vmul.f32 %v521_v0, %v891_v42  ;;  %vm592_vm15 = vcmp.ge.s32.totalorder %v1161_v32, 5 }
  0x7e   :  { %v420_v19 = vmul.f32 %v419_v41, %v411_v4  ;;  %v472_v47 = vadd.f32 0.5, %v467_v14  ;;  %v476_v20 = vadd.f32 0.5, %v471_v15  ;;  %v416_v21 = vsel %vm413_vm13, %v415_v9, %v755_v56 }
  0x7f   :  { %v418_v24 = vadd.f32 3.5, %v417_v27  ;;  %v483_v33 = vand.u32 2147483647, %v467_v14  ;;  %v484_v46 = vand.u32 2147483647, %v471_v15  ;;  %vm487_vm0 = vcmp.ge.f32.partialorder %v467_v14, 0.0 }
  0x80   :  { %v421_v26 = vadd.f32 0.5, %v420_v19  ;;  %v473_v50 = vfloor.f32 %v472_v47  ;;  %v477_v44 = vfloor.f32 %v476_v20  ;;  %v354_v61 = vand.u32 1, %v1260_v11 }
  0x81   :  { %v530_v45 = vsub.f32 %v528_v10, %v529_v28  ;;  %v536_v23 = vadd.f32 %v535_v16, %v534_v39  ;;  %vm593_vm1 = vcmp.le.s32.totalorder %v1161_v32, 2  ;;  %v356_v53 = vshra.s32 %v1260_v11, 1 }
  0x82   :  { %v422_v54 = vmul.f32 %v421_v26, %v416_v21  ;;  %v759_v55 = vclamps-f32 %v473_v50, 1.0  ;;  %v760_v29 = vclamps-f32 %v477_v44, 1.0  ;;  %vm1269_vm2 = vcmp.ge.f32.partialorder %v483_v33, %v484_v46 }
  0x83   :  { %v488_v8 = vsel %vm487_vm0, 1.0, %v822_v52  ;;  %v533_v59 = vadd.f32 %v531_v30, %v530_v45  ;;  %v539_v60 = vadd.f32 %v537_v37, %v536_v23  ;;  %vm1277_vm5 = vmxor %vm1269_vm2, %vm823_vm14  ;;  %vm492_vm8 = vcmp.ge.f32.partialorder %v471_v15, 0.0 }
  0x84   :  { %v423_v22 = vadd.f32 %v422_v54, %v418_v24  ;;  %vm480_vm3 = vcmp.eq.f32.partialorder %v759_v55, 0.0  ;;  %vm481_vm4 = vcmp.eq.f32.partialorder %v760_v29, 0.0  ;;  %v594_v35 = vsel %vm592_vm15, 1.0, %v821_v51 }
  0x85   :  { %vm1281_vm9 = vmand %vm480_vm3, %vm481_vm4  ;;  %v540_v0 = vmul.f32 %v533_v59, %v879_v36  ;;  %v541_v57 = vmul.f32 %v539_v60, %v891_v42  ;;  %v544_v48 = vmul.f32 %v539_v60, %v879_v36  ;;  %v545_v25 = vmul.f32 %v533_v59, %v891_v42 }
  0x86   :  { %v787_v1 = vtrunc.f32 %v423_v22  ;;  %vm486_vm10 = vmand %vm1281_vm9, %vm1269_vm2  ;;  %v595_v3 = vsel %vm593_vm1, 1.0, %v821_v51  ;;  %v599_v31 = vmul.f32 2.0, %v1250_v58  ;;  %v359_v5 = vshra.s32 %v1260_v11, 2 }
  0x87   :  { %v489_v30 = vsel %vm486_vm10, %v488_v8, %v759_v55  ;;  %v542_v37 = vadd.f32 %v541_v57, %v540_v0  ;;  %v546_v4 = vsub.f32 %v544_v48, %v545_v25  ;;  %vm491_vm11 = vmand %vm1281_vm9, %vm1277_vm5  ;;  %v493_v38 = vsel %vm492_vm8, 1.0, %v822_v52 }
  0x88   :  { %v495_v9 = vmul.f32 2.5, %v489_v30  ;;  %v497_v10 = vmul.f32 0.5, %v489_v30  ;;  %v355_v27 = vadd.s32 %v354_v61, %v285_v6  ;;  %v357_v41 = vand.u32 1, %v356_v53 }
  0x89   :  { %v543_v51 = vmul.f32 %v542_v37, %v893_v43  ;;  %v547_v14 = vmul.f32 %v546_v4, %v893_v43  ;;  %v1309_v28 = vcvt.f32.s32 %v787_v1  ;;  %v596_v11 = vsub.f32 %v594_v35, %v595_v3 }
  0x8a   :  { %v498_v39 = vmul.f32 %v497_v10, %v489_v30  ;;  %v767_v16 = vadd.f32 -6.0, %v1250_v58  ;;  %v494_v19 = vsel %vm491_vm11, %v493_v38, %v760_v29  ;;  %v768_v21 = vadd.f32 -7.0, %v599_v31 }
  0x8b   :  { %v548_v47 = vadd.f32 0.5, %v543_v51  ;;  %v552_v20 = vadd.f32 0.5, %v547_v14  ;;  %v496_v15 = vadd.f32 3.5, %v495_v9  ;;  %v559_v33 = vand.u32 2147483647, %v543_v51 }
  0x8c   :  { %v499_v24 = vadd.f32 0.5, %v498_v39  ;;  %v560_v46 = vand.u32 2147483647, %v547_v14  ;;  %v766_v50 = vadd.f32 -1.0, %v1250_v58  ;;  %v606_v44 = vrot.slane %v887_v40, 6 }
  0x8d   :  { %v549_v6 = vfloor.f32 %v548_v47  ;;  %v553_v26 = vfloor.f32 %v552_v20  ;;  %v358_v61 = vadd.s32 %v357_v41, %v355_v27  ;;  %v360_v45 = vand.u32 1, %v359_v5 }
  0x8e   :  { %v500_v23 = vmul.f32 %v499_v24, %v494_v19  ;;  %vm563_vm12 = vcmp.ge.f32.partialorder %v543_v51, 0.0  ;;  %v425_v53 = vxor.u32 %v1309_v28, %v984_v7  ;;  %v603_v29 = vmul.f32 %v596_v11, %v879_v36 }
  0x8f   :  { %v764_v54 = vclamps-f32 %v549_v6, 1.0  ;;  %v765_v55 = vclamps-f32 %v553_v26, 1.0  ;;  %vm1317_vm6 = vcmp.ge.f32.partialorder %v559_v33, %v560_v46  ;;  %v601_v58 = vsel %vm592_vm15, %v767_v16, %v768_v21 }
  0x90   :  { %v501_v56 = vadd.f32 %v500_v23, %v496_v15  ;;  %v610_v40 = vmul.f32 %v596_v11, %v891_v42  ;;  %v564_v59 = vsel %vm563_vm12, 1.0, %v822_v52  ;;  %vm1328_vm0 = vmxor %vm1317_vm6, %vm823_vm14  ;;  %v602_v60 = vsel %vm593_vm1, %v766_v50, %v601_v58 }
  0x91   :  { %vm556_vm7 = vcmp.eq.f32.partialorder %v764_v54, 0.0  ;;  %vm557_vm13 = vcmp.eq.f32.partialorder %v765_v55, 0.0  ;;  %vm568_vm15 = vcmp.ge.f32.partialorder %v547_v14, 0.0  ;;  %v604_v62 = vmul.f32 %v602_v60, %v891_v42 }
  0x92   :  { %vm1334_vm2 = vmand %vm556_vm7, %vm557_vm13  ;;  %v609_v63 = vmul.f32 %v602_v60, %v879_v36  ;;  %v612_v0 = vrot.slane %v1142_v17, 6  ;;  %v361_v57 = vadd.s32 %v360_v45, %v358_v61  ;;  %v426_v48 = vand.u32 1, %v425_v53 }
  0x93   :  { %v428_v25 = vshra.s32 %v425_v53, 1  ;;  %vm562_vm3 = vmand %vm1334_vm2, %vm1317_vm6  ;;  %v789_v1 = vtrunc.f32 %v501_v56  ;;  %v605_v3 = vsub.f32 %v603_v29, %v604_v62  ;;  %v569_v37 = vsel %vm568_vm15, 1.0, %v822_v52 }
  0x94   :  { %v565_v35 = vsel %vm562_vm3, %v564_v59, %v764_v54  ;;  %v611_v30 = vadd.f32 %v610_v40, %v609_v63  ;;  %vm567_vm1 = vmand %vm1334_vm2, %vm1328_vm0  ;;  %v427_v38 = vadd.s32 %v426_v48, %v361_v57  ;;  %v431_v10 = vshra.s32 %v425_v53, 2 }
  0x95   :  { %v571_v17 = vmul.f32 2.5, %v565_v35  ;;  %v573_v4 = vmul.f32 0.5, %v565_v35  ;;  %v608_v31 = vadd.f32 %v606_v44, %v605_v3  ;;  %v429_v9 = vand.u32 1, %v428_v25 }
  0x96   :  { %v614_v5 = vadd.f32 %v612_v0, %v611_v30  ;;  %v1350_v41 = vcvt.f32.s32 %v789_v1  ;;  %v570_v51 = vsel %vm567_vm1, %v569_v37, %v765_v55  ;;  %v133_v20 = vshll.u32 %v1077_v12, 21 }
  0x97   :  { %v574_v27 = vmul.f32 %v573_v4, %v565_v35  ;;  %v572_v14 = vadd.f32 3.5, %v571_v17  ;;  %v615_v39 = vmul.f32 %v608_v31, %v879_v36  ;;  %v620_v47 = vmul.f32 %v608_v31, %v891_v42 }
  0x98   :  { %v616_v16 = vmul.f32 %v614_v5, %v891_v42  ;;  %v619_v19 = vmul.f32 %v614_v5, %v879_v36  ;;  %v210_v33 = vshll.u32 %v1103_v13, 18  ;;  %v430_v46 = vadd.s32 %v429_v9, %v427_v38 }
  0x99   :  { %v575_v11 = vadd.f32 0.5, %v574_v27  ;;  %v432_v6 = vand.u32 1, %v431_v10  ;;  %v503_v26 = vxor.u32 %v1350_v41, %v1065_v49  ;;  %v286_v12 = vshll.u32 %v1144_v18, 15 }
  0x9a   :  { %v617_v15 = vadd.f32 %v616_v16, %v615_v39  ;;  %v621_v24 = vsub.f32 %v619_v19, %v620_v47  ;;  %v211_v42 = vadd.s32 %v210_v33, %v133_v20  ;;  %v362_v49 = vshll.u32 %v1234_v2, 12 }
  0x9b   :  { %v576_v21 = vmul.f32 %v575_v11, %v570_v51  ;;  %v433_v23 = vadd.s32 %v432_v6, %v430_v46  ;;  %v504_v53 = vand.u32 1, %v503_v26  ;;  %v506_v54 = vshra.s32 %v503_v26, 1 }
  0x9c   :  { %v618_v44 = vmul.f32 %v617_v15, %v893_v43  ;;  %v622_v61 = vmul.f32 %v621_v24, %v893_v43  ;;  %v287_v59 = vadd.s32 %v286_v12, %v211_v42  ;;  %v509_v60 = vshra.s32 %v503_v26, 2 }
  0x9d   :  { %v577_v50 = vadd.f32 %v576_v21, %v572_v14  ;;  %v505_v43 = vadd.s32 %v504_v53, %v433_v23  ;;  %v507_v7 = vand.u32 1, %v506_v54  ;;  %v434_v0 = vshll.u32 %v1309_v28, 9 }
  0x9e   :  { %v623_v36 = vadd.f32 0.5, %v618_v44  ;;  %v627_v45 = vadd.f32 0.5, %v622_v61  ;;  %v634_v56 = vand.u32 2147483647, %v618_v44  ;;  %v635_v8 = vand.u32 2147483647, %v622_v61 }
  0x9f   :  { %v791_v55 = vtrunc.f32 %v577_v50  ;;  %vm638_vm4 = vcmp.ge.f32.partialorder %v618_v44, 0.0  ;;  %vm643_vm12 = vcmp.ge.f32.partialorder %v622_v61, 0.0  ;;  %v363_v63 = vadd.s32 %v362_v49, %v287_v59 }
  0xa0   :  { %v624_v13 = vfloor.f32 %v623_v36  ;;  %v628_v29 = vfloor.f32 %v627_v45  ;;  %vm636_vm8 = vcmp.ge.f32.partialorder %v634_v56, %v635_v8  ;;  %v639_v18 = vsel %vm638_vm4, 1.0, %v822_v52  ;;  %v803_v8 = vld [vmem:[%s1409_s1 + $0x4] sm:$0x3] }
  0xa1   :  { %v792_v22 = vcvt.f32.s32 %v791_v55  ;;  %vm1366_vm10 = vmxor %vm636_vm8, %vm823_vm14  ;;  %v508_v57 = vadd.s32 %v507_v7, %v505_v43  ;;  %v510_v48 = vand.u32 1, %v509_v60  ;;  %v644_v35 = vsel %vm643_vm12, 1.0, %v822_v52  ;;  %v805_v43 = vld [vmem:[%s1409_s1 + $0x2] sm:$0x3] }
  0xa2   :  { %v769_v58 = vclamps-f32 %v624_v13, 1.0  ;;  %v770_v40 = vclamps-f32 %v628_v29, 1.0  ;;  %v435_v37 = vadd.s32 %v434_v0, %v363_v63  ;;  %v512_v28 = vshll.u32 %v1350_v41, 6 }
  0xa3   :  { %v579_v25 = vxor.u32 %v792_v22, %v1176_v34  ;;  %v511_v17 = vadd.s32 %v510_v48, %v508_v57  ;;  %v588_v27 = vshll.u32 %v792_v22, 3  ;;  %vm681_vm7 = vcmask 1041408  }
  0xa4   :  { %vm631_vm5 = vcmp.eq.f32.partialorder %v769_v58, 0.0  ;;  %vm632_vm9 = vcmp.eq.f32.partialorder %v770_v40, 0.0  ;;  %v513_v10 = vadd.s32 %v512_v28, %v435_v37 }
  0xa5   :  { %vm1370_vm11 = vmand %vm631_vm5, %vm632_vm9  ;;  %v580_v4 = vand.u32 1, %v579_v25  ;;  %v582_v31 = vshra.s32 %v579_v25, 1  ;;  %v585_v39 = vshra.s32 %v579_v25, 2 }
  0xa6   :  { %vm637_vm6 = vmand %vm1370_vm11, %vm636_vm8  ;;  %v589_v20 = vadd.s32 %v588_v27, %v513_v10 }
  0xa7   :  { %v640_v1 = vsel %vm637_vm6, %v639_v18, %v769_v58  ;;  %vm642_vm14 = vmand %vm1370_vm11, %vm1366_vm10  ;;  %v581_v51 = vadd.s32 %v580_v4, %v511_v17  ;;  %v583_v14 = vand.u32 1, %v582_v31  ;;  %v586_v19 = vand.u32 1, %v585_v39 }
  0xa8   :  { %v646_v3 = vmul.f32 2.5, %v640_v1  ;;  %v648_v30 = vmul.f32 0.5, %v640_v1  ;;  %v645_v5 = vsel %vm642_vm14, %v644_v35, %v770_v40  ;;  %v804_v40 = vld [vmem:[%s1409_s1] sm:$0x3] }
  0xa9   :  { %v584_v52 = vadd.s32 %v583_v14, %v581_v51 }
  0xaa   :  { %v649_v34 = vmul.f32 %v648_v30, %v640_v1  ;;  %v647_v38 = vadd.f32 3.5, %v646_v3 }
  0xab   :  { %v587_v41 = vadd.s32 %v586_v19, %v584_v52 }
  0xac   :  { %v650_v9 = vadd.f32 0.5, %v649_v34 }
  0xae   :  { %v651_v11 = vmul.f32 %v650_v9, %v645_v5 }
  0xb0   :  { %v652_v16 = vadd.f32 %v651_v11, %v647_v38  ;;  %v710_v38 = vlaneseq }
  0xb2   :  { %v793_v47 = vtrunc.f32 %v652_v16  ;;  %v711_v9 = vand.u32 127, %v710_v38 }
  0xb4   :  { %v794_v21 = vcvt.f32.s32 %v793_v47  ;;  %vm712_vm13 = vcmp.eq.s32.totalorder %v711_v9, 0  ;;  %vm715_vm0 = vcmp.eq.s32.totalorder %v711_v9, 1 }
  0xb6   :  { %v654_v15 = vxor.u32 %v794_v21, %v1161_v32  ;;  %v663_v24 = vadd.s32 %v794_v21, %v589_v20 }
  0xb8   :  { %v655_v33 = vand.u32 1, %v654_v15  ;;  %v657_v46 = vshra.s32 %v654_v15, 1  ;;  %v660_v6 = vshra.s32 %v654_v15, 2  ;;  %v664_v26 = vshra.s32 %v663_v24, 16 }
  0xb9   :  { %v668_v50 = vshra.s32 %v663_v24, 8  ;;  %v672_v44 = vand.u32 255, %v663_v24 }
  0xba   :  { %v656_v61 = vadd.s32 %v655_v33, %v587_v41  ;;  %v658_v36 = vand.u32 1, %v657_v46  ;;  %v661_v45 = vand.u32 1, %v660_v6  ;;  %v665_v42 = vand.u32 255, %v664_v26 }
  0xbb   :  { %v669_v12 = vand.u32 255, %v668_v50  ;;  %v673_v23 = vcvt.s32.f32 %v672_v44 }
  0xbc   :  { %v659_v53 = vadd.s32 %v658_v36, %v656_v61  ;;  %v666_v54 = vcvt.s32.f32 %v665_v42 }
  0xbd   :  { %v670_v55 = vcvt.s32.f32 %v669_v12  ;;  %v674_v13 = vmul.f32 0.003921569, %v673_v23 }
  0xbe   :  { %v662_v29 = vadd.s32 %v661_v45, %v659_v53  ;;  %v667_v56 = vmul.f32 0.003921569, %v666_v54 }
  0xbf   :  { %v671_v32 = vmul.f32 0.003921569, %v670_v55  ;;  %v697_v49 = vsub.f32 %v803_v8, %v674_v13  ;;  %772 = vst [vmem:[%s1411_s3 + $0x4] sm:$0x3] %v674_v13 }
  0xc0   :  { %v680_v58 = vcvt.s32.f32 %v662_v29  ;;  %v692_v59 = vsub.f32 %v804_v40, %v667_v56  ;;  %675 = vst [vmem:[%s1411_s3] sm:$0x3] %v667_v56 }
  0xc1   :  { %v694_v7 = vsub.f32 %v805_v43, %v671_v32  ;;  %771 = vst [vmem:[%s1411_s3 + $0x2] sm:$0x3] %v671_v32  ;;  %v698_v62 = vand.u32 2147483647, %v697_v49 }
  0xc2   :  { %v682_v60 = vsel %vm681_vm7, %v680_v58, 0.0  ;;  %v693_v22 = vand.u32 2147483647, %v692_v59 }
  0xc3   :  { %683 = vadd.xlane.f32.xlu0 %v682_v60  ;;  %v695_v18 = vand.u32 2147483647, %v694_v7 }
  0xc5   :  { %v696_v2 = vadd.f32 %v695_v18, %v693_v22 }
  0xc7   :  { %v699_v63 = vadd.f32 %v698_v62, %v696_v2 }
  0xc9   :  { %v700_v0 = vsel %vm681_vm7, %v699_v63, 0.0 }
  0xca   :  { %701 = vadd.xlane.f32.xlu0 %v700_v0 }
 0x150   :  { %v684_v57 = vpop.xlane.xlu0 %683 }
 0x151   :  { %v685_v48 = vrot.slane %v684_v57, 4 }
 0x153   :  { %v686_v25 = vadd.f32 %v685_v48, %v684_v57 }
 0x155   :  { %v687_v1 = vrot.slane %v686_v25, 2 }
 0x157   :  { %v702_v35 = vpop.xlane.xlu0 %701  ;;  %v688_v3 = vadd.f32 %v687_v1, %v686_v25 }
 0x158   :  { %v703_v30 = vrot.slane %v702_v35, 4 }
 0x159   :  { %v689_v37 = vrot.slane %v688_v3, 1 }
 0x15a   :  { %v704_v28 = vadd.f32 %v703_v30, %v702_v35 }
 0x15b   :  { %v690_v17 = vadd.f32 %v689_v37, %v688_v3 }
 0x15c   :  { %v705_v4 = vrot.slane %v704_v28, 2 }
 0x15d   :  { %795 = vpush %v690_v17 }
 0x15e   :  { %v706_v31 = vadd.f32 %v705_v4, %v704_v28 }
 0x160   :  { %v707_v34 = vrot.slane %v706_v31, 1 }
 0x162   :  { %v708_v5 = vadd.f32 %v707_v34, %v706_v31 }
 0x164   :  { %797 = vpush %v708_v5 }
 0x18e   :  { %s796_s1 = spop %795 }
 0x18f   :  { %v713_v10 = vstv %s796_s1 }
 0x190   :  { %v714_v51 = vsel %vm712_vm13, %v713_v10, 0.0 }
 0x195   :  { %s798_s3 = spop %797 }
 0x196   :  { %v716_v27 = vstv %s798_s3 }
 0x197   :  { %v717_v14 = vsel %vm715_vm0, %v716_v27, 0.0 }
 0x198   :  { %v718_v39 = vadd.f32 %v717_v14, %v714_v51 }
 0x19a   :  { %719 = vst [vmem:[%s1412_s4] sm:$0x1] %v718_v39 }
 0x19b   :  { %728 = vsyncpa [#allocation3], 1 }

</bundles_post_ra>
